<compile_context>
chip_gen: v5e
topology: v5e:2x2
jax: 0.10.0
libtpu: 0.0.40
codegen_flags: <defaults>
</compile_context>

<pallas_src>
import math

import jax
import jax.numpy as jnp
from jax.experimental import pallas as pl
from jax.experimental.pallas import tpu as pltpu

# ----------------------------- config (small, synthetic) ---------------------
B = 2              # batch
S = 8              # sequence length
H = 64             # hidden size
N_HEADS = 2
D_HEAD = H // N_HEADS      # 32
DP = 128                   # per-head dim zero-padded to one full 128-lane block
FF = 4 * H                 # 256
N_LAYERS = 2
VOCAB = 128
MAX_POS = 32
N_CLASSES = 3
N_CLASSES_PAD = 128        # lane-dense classifier output width
LN_EPS = 1e-12
BS = B * S

# ----------------------------- cost estimate (static) ------------------------
_FLOPS = (
    2 * BS * VOCAB * H                              # one-hot embedding matmul
    + N_LAYERS * (
        N_HEADS * 2 * BS * H * 3 * DP               # fused per-head QKV proj
        + 2 * (N_HEADS * B) * S * S * DP            # scores
        + 2 * (N_HEADS * B) * S * S * DP            # probs @ V
        + N_HEADS * 2 * BS * DP * H                 # output projection
        + 2 * BS * H * FF                           # FFN up
        + 2 * BS * FF * H)                          # FFN down
    + 2 * BS * H * N_CLASSES_PAD)                   # classifier

_TRANSCENDENTALS = (
    N_LAYERS * N_HEADS * B * S * S                  # softmax exp
    + N_LAYERS * BS * FF                            # gelu tanh
    + (1 + 2 * N_LAYERS) * BS                       # layernorm rsqrt
    + N_LAYERS * N_HEADS * B * S)                   # softmax approx reciprocal


# ----------------------------- in-kernel helpers -----------------------------
def _layernorm(x, gamma, beta):
    # single-pass statistics: E[x] and E[x^2] (two independent reductions,
    # no second full-width subtract before the variance reduce).
    inv_n = 1.0 / x.shape[-1]
    mean = jnp.sum(x, axis=-1, keepdims=True) * inv_n
    ex2 = jnp.sum(x * x, axis=-1, keepdims=True) * inv_n
    var = ex2 - mean * mean
    return (x - mean) * jax.lax.rsqrt(var + LN_EPS) * gamma + beta


def _gelu(x):
    # TODO(synk): DistilBERT uses exact erf GELU; tanh approximation differs ~1e-3.
    c = math.sqrt(2.0 / math.pi)
    return 0.5 * x * (1.0 + jnp.tanh(c * (x + 0.044715 * x * x * x)))


def _softmax_lastdim(x):
    # f32 statistics; divide replaced by EUP approx reciprocal.
    m = jnp.max(x, axis=-1, keepdims=True)
    e = jnp.exp(x - m)
    return e * pl.reciprocal(jnp.sum(e, axis=-1, keepdims=True), approx=True)


def _mm(x, w_bf16):
    # MXU matmul: bf16 operands, f32 accumulation (astype is a no-op if x is bf16).
    return jnp.dot(x.astype(jnp.bfloat16), w_bf16,
                   preferred_element_type=jnp.float32)


# ----------------------------- fused forward kernel --------------------------
def dbert_kernel(ids_ref, mask_ref, wemb_ref, pos_ref, eg_ref, eb_ref,
                 wqkv_ref, bqkv_ref, wo_ref, bo_ref, ln1g_ref, ln1b_ref,
                 w1_ref, fb1_ref, w2_ref, fb2_ref, ln2g_ref, ln2b_ref,
                 fcw_ref, fcb_ref, o_ref):
    # ---- embeddings: one-hot token gather on the MXU + positions + LN ------
    ids = ids_ref[...]                                           # (BS, 1) i32
    vocab_iota = jax.lax.broadcasted_iota(jnp.int32, (BS, VOCAB), 1)
    onehot = jnp.where(vocab_iota == ids, 1.0, 0.0).astype(jnp.bfloat16)
    tok = jnp.dot(onehot, wemb_ref[...],
                  preferred_element_type=jnp.float32)            # (BS, H)
    emb = (tok.reshape(B, S, H) + pos_ref[0:S, :][None, :, :]).reshape(BS, H)
    x = _layernorm(emb, eg_ref[...], eb_ref[...])

    # ---- attention mask -> additive bias, replicated over heads (hoisted) --
    neg = (mask_ref[...].astype(jnp.float32) - 1.0) * 1e9        # (B, 1, S)
    neg_hb = jnp.broadcast_to(neg[None], (N_HEADS, B, 1, S)
                              ).reshape(N_HEADS * B, 1, S)       # (NH*B, 1, S)

    for li in range(N_LAYERS):                                   # static unroll
        xb = x.astype(jnp.bfloat16)                              # hoisted cast

        # -- per-head fused QKV projection; head blocks are 128-lane aligned --
        q_l, k_l, v_l = [], [], []
        for h in range(N_HEADS):
            qkv = (jnp.dot(xb, wqkv_ref[li, h],
                           preferred_element_type=jnp.float32)
                   + bqkv_ref[li, h])                            # (BS, 3*DP)
            q_l.append(qkv[:, 0:DP].reshape(B, S, DP))           # vreg-aligned
            k_l.append(qkv[:, DP:2 * DP].reshape(B, S, DP))
            v_l.append(qkv[:, 2 * DP:3 * DP].reshape(B, S, DP))
        qh = jnp.concatenate(q_l, axis=0)                        # (NH*B, S, DP)
        kh = jnp.concatenate(k_l, axis=0)
        vh = jnp.concatenate(v_l, axis=0)

        # 1/sqrt(D_HEAD) is already folded into the Q weights/bias at init
        scores = jnp.einsum('bqd,bkd->bqk',
                            qh.astype(jnp.bfloat16), kh.astype(jnp.bfloat16),
                            preferred_element_type=jnp.float32)  # (NH*B, S, S)
        probs = _softmax_lastdim(scores + neg_hb)
        ctx = jnp.einsum('bqk,bkd->bqd',
                         probs.astype(jnp.bfloat16), vh.astype(jnp.bfloat16),
                         preferred_element_type=jnp.float32)     # (NH*B, S, DP)

        # -- head merge: per-head output matmuls summed (W_O pad rows are 0) --
        attn = bo_ref[li]                                        # (1, H)
        for h in range(N_HEADS):
            ctx_h = ctx[h * B:(h + 1) * B].reshape(BS, DP)
            attn = attn + _mm(ctx_h, wo_ref[li, h])
        x = _layernorm(x + attn, ln1g_ref[li], ln1b_ref[li])

        # -- feed-forward --
        hmid = _gelu(_mm(x, w1_ref[li]) + fb1_ref[li])
        ffn = _mm(hmid, w2_ref[li]) + fb2_ref[li]
        x = _layernorm(x + ffn, ln2g_ref[li], ln2b_ref[li])

    # dropout is identity at inference; classifier head, lane-dense (BS, 128)
    o_ref[...] = _mm(x, fcw_ref[...]) + fcb_ref[...]


# ----------------------------- wrapper ----------------------------------------
@jax.jit
def dbert_forward(params, ids, mask):
    # Only wrapper-side glue left: two trivial reshapes of 16-element int32
    # tensors and the final logits slice; the gather / positional add / mask
    # arithmetic all live inside the single pallas_call now.
    args = (ids.reshape(BS, 1).astype(jnp.int32),
            mask.reshape(B, 1, S).astype(jnp.int32),
            params["word_emb"], params["pos_emb"],
            params["emb_ln_g"], params["emb_ln_b"],
            params["wqkv"], params["bqkv"], params["wo"], params["bo"],
            params["ln1_g"], params["ln1_b"],
            params["w1"], params["b1"], params["w2"], params["b2"],
            params["ln2_g"], params["ln2_b"],
            params["fc_w"], params["fc_b"])

    bytes_accessed = (sum(int(a.size) * a.dtype.itemsize for a in args)
                      + BS * N_CLASSES_PAD * 4)

    logits_pad = pl.pallas_call(
        dbert_kernel,
        out_shape=jax.ShapeDtypeStruct((BS, N_CLASSES_PAD), jnp.float32),
        in_specs=[pl.BlockSpec(memory_space=pltpu.MemorySpace.VMEM)
                  for _ in args],
        out_specs=pl.BlockSpec(memory_space=pltpu.MemorySpace.VMEM),
        cost_estimate=pl.CostEstimate(flops=_FLOPS,
                                      transcendentals=_TRANSCENDENTALS,
                                      bytes_accessed=bytes_accessed),
    )(*args)

    return logits_pad.reshape(B, S, N_CLASSES_PAD)[:, :, :N_CLASSES]


# ----------------------------- parameter init ---------------------------------
def init_params(key):
    f32, bf16 = jnp.float32, jnp.bfloat16

    def nrm(k, shape, scale=0.02):
        return (scale * jax.random.normal(k, shape)).astype(f32)

    ks = jax.random.split(key, 10)
    inv_sqrt_d = 1.0 / math.sqrt(D_HEAD)

    # per-head attention weights; attention scale folded into Q weight + bias
    wq = nrm(ks[0], (N_LAYERS, N_HEADS, H, D_HEAD)) * inv_sqrt_d
    wk = nrm(ks[1], (N_LAYERS, N_HEADS, H, D_HEAD))
    wv = nrm(ks[2], (N_LAYERS, N_HEADS, H, D_HEAD))

    def pad_cols(w):   # (..., D_HEAD) -> (..., DP) zero-padded (128-lane blocks)
        pad = [(0, 0)] * (w.ndim - 1) + [(0, DP - D_HEAD)]
        return jnp.pad(w, pad)

    wqkv = jnp.concatenate([pad_cols(wq), pad_cols(wk), pad_cols(wv)],
                           axis=-1).astype(bf16)          # (L, NH, H, 3*DP)
    bq = jnp.zeros((N_LAYERS, N_HEADS, 1, D_HEAD), f32) * inv_sqrt_d
    bk = jnp.zeros((N_LAYERS, N_HEADS, 1, D_HEAD), f32)
    bv = jnp.zeros((N_LAYERS, N_HEADS, 1, D_HEAD), f32)
    bqkv = jnp.concatenate([pad_cols(bq), pad_cols(bk), pad_cols(bv)], axis=-1)

    wo = jnp.pad(nrm(ks[3], (N_LAYERS, N_HEADS, D_HEAD, H)),
                 ((0, 0), (0, 0), (0, DP - D_HEAD), (0, 0))).astype(bf16)

    params = {
        # matmul weights stored bf16 (MXU-native); biases / LN / pos in f32.
        "word_emb": nrm(ks[4], (VOCAB, H)).astype(bf16),
        "pos_emb": nrm(ks[5], (MAX_POS, H)),
        "emb_ln_g": jnp.ones((1, H), f32),
        "emb_ln_b": jnp.zeros((1, H), f32),
        "wqkv": wqkv,                                    # (L, NH, H, 3*DP)
        "bqkv": bqkv,                                    # (L, NH, 1, 3*DP)
        "wo": wo,                                        # (L, NH, DP, H)
        "bo": jnp.zeros((N_LAYERS, 1, H), f32),
        "ln1_g": jnp.ones((N_LAYERS, 1, H), f32),
        "ln1_b": jnp.zeros((N_LAYERS, 1, H), f32),
        "w1": nrm(ks[6], (N_LAYERS, H, FF)).astype(bf16),
        "b1": jnp.zeros((N_LAYERS, 1, FF), f32),
        "w2": nrm(ks[7], (N_LAYERS, FF, H)).astype(bf16),
        "b2": jnp.zeros((N_LAYERS, 1, H), f32),
        "ln2_g": jnp.ones((N_LAYERS, 1, H), f32),
        "ln2_b": jnp.zeros((N_LAYERS, 1, H), f32),
    }

    fc_w = nrm(ks[8], (H, N_CLASSES))
    # classifier padded to a lane-dense 128-wide output; valid logits in [:, :3]
    params["fc_w"] = (jnp.zeros((H, N_CLASSES_PAD), f32)
                      .at[:, :N_CLASSES].set(fc_w).astype(bf16))
    params["fc_b"] = jnp.zeros((1, N_CLASSES_PAD), f32)
    return params


# ----------------------------- main --------------------------------------------
if __name__ == "__main__":
    key = jax.random.PRNGKey(0)
    k_ids, k_par = jax.random.split(key)

    ids = jax.random.randint(k_ids, (B, S), 0, VOCAB, dtype=jnp.int32)
    mask = jnp.ones((B, S), jnp.int32).at[1, 6:].set(0)   # pad out tail of sample 1

    params = init_params(k_par)

    logits = dbert_forward(params, ids, mask)
    jax.block_until_ready(logits)

    assert logits.shape == (B, S, N_CLASSES)
    assert bool(jnp.all(jnp.isfinite(logits)))
    print("KERNEL_OK")
</pallas_src>

<mosaic_0001>
module attributes {stable_mosaic.version = 11 : i64} {
  func.func @dbert_kernel(%arg0: memref<16x1xi32, #tpu.memory_space<vmem>>, %arg1: memref<2x1x8xi32, #tpu.memory_space<vmem>>, %arg2: memref<128x64xbf16, #tpu.memory_space<vmem>>, %arg3: memref<32x64xf32, #tpu.memory_space<vmem>>, %arg4: memref<1x64xf32, #tpu.memory_space<vmem>>, %arg5: memref<1x64xf32, #tpu.memory_space<vmem>>, %arg6: memref<2x2x64x384xbf16, #tpu.memory_space<vmem>>, %arg7: memref<2x2x1x384xf32, #tpu.memory_space<vmem>>, %arg8: memref<2x2x128x64xbf16, #tpu.memory_space<vmem>>, %arg9: memref<2x1x64xf32, #tpu.memory_space<vmem>>, %arg10: memref<2x1x64xf32, #tpu.memory_space<vmem>>, %arg11: memref<2x1x64xf32, #tpu.memory_space<vmem>>, %arg12: memref<2x64x256xbf16, #tpu.memory_space<vmem>>, %arg13: memref<2x1x256xf32, #tpu.memory_space<vmem>>, %arg14: memref<2x256x64xbf16, #tpu.memory_space<vmem>>, %arg15: memref<2x1x64xf32, #tpu.memory_space<vmem>>, %arg16: memref<2x1x64xf32, #tpu.memory_space<vmem>>, %arg17: memref<2x1x64xf32, #tpu.memory_space<vmem>>, %arg18: memref<64x128xbf16, #tpu.memory_space<vmem>>, %arg19: memref<1x128xf32, #tpu.memory_space<vmem>>, %arg20: memref<16x128xf32, #tpu.memory_space<vmem>>) attributes {dimension_semantics = [], scalar_prefetch = 0 : i64, scratch_operands = 0 : i64, tpu.core_type = #tpu.core_type<tc>} {
    %c0 = arith.constant 0 : index
    %c0_0 = arith.constant 0 : index
    %0 = vector.load %arg0[%c0, %c0_0] : memref<16x1xi32, #tpu.memory_space<vmem>>, vector<16x1xi32>
    %1 = tpu.iota {dimensions = array<i32: 1>} : vector<16x128xi32>
    %2 = vector.broadcast %0 : vector<16x1xi32> to vector<16x128xi32>
    %3 = arith.cmpi eq, %1, %2 : vector<16x128xi32>
    %cst = arith.constant 1.000000e+00 : f32
    %cst_1 = arith.constant 0.000000e+00 : f32
    %4 = vector.broadcast %cst : f32 to vector<16x128xf32>
    %5 = vector.broadcast %cst_1 : f32 to vector<16x128xf32>
    %6 = arith.select %3, %4, %5 : vector<16x128xi1>, vector<16x128xf32>
    %7 = arith.truncf %6 : vector<16x128xf32> to vector<16x128xbf16>
    %c0_2 = arith.constant 0 : index
    %c0_3 = arith.constant 0 : index
    %8 = vector.load %arg2[%c0_2, %c0_3] : memref<128x64xbf16, #tpu.memory_space<vmem>>, vector<128x64xbf16>
    %cst_4 = arith.constant dense<0.000000e+00> : vector<16x64xf32>
    %9 = tpu.matmul %7, %8, %cst_4 {dimension_numbers = #tpu.dot_dimension_numbers<[1], [0], [0], [1], [0, 0, 1, 1], [], []>} : vector<16x128xbf16>, vector<128x64xbf16>, vector<16x64xf32> -> vector<16x64xf32>
    %10 = vector.shape_cast %9 : vector<16x64xf32> to vector<2x8x64xf32>
    %c0_5 = arith.constant 0 : index
    %c0_6 = arith.constant 0 : index
    %11 = vector.load %arg3[%c0_5, %c0_6] : memref<32x64xf32, #tpu.memory_space<vmem>>, vector<8x64xf32>
    %12 = vector.shape_cast %11 : vector<8x64xf32> to vector<1x8x64xf32>
    %13 = vector.broadcast %12 : vector<1x8x64xf32> to vector<2x8x64xf32>
    %14 = arith.addf %10, %13 : vector<2x8x64xf32>
    %15 = vector.shape_cast %14 : vector<2x8x64xf32> to vector<16x64xf32>
    %c0_7 = arith.constant 0 : index
    %c0_8 = arith.constant 0 : index
    %16 = vector.load %arg4[%c0_7, %c0_8] : memref<1x64xf32, #tpu.memory_space<vmem>>, vector<1x64xf32>
    %c0_9 = arith.constant 0 : index
    %c0_10 = arith.constant 0 : index
    %17 = vector.load %arg5[%c0_9, %c0_10] : memref<1x64xf32, #tpu.memory_space<vmem>>, vector<1x64xf32>
    %cst_11 = arith.constant dense<0.000000e+00> : vector<16xf32>
    %18 = vector.multi_reduction <add>, %15, %cst_11 [1] : vector<16x64xf32> to vector<16xf32>
    %19 = vector.shape_cast %18 : vector<16xf32> to vector<16x1xf32>
    %cst_12 = arith.constant 1.562500e-02 : f32
    %20 = vector.broadcast %cst_12 : f32 to vector<16x1xf32>
    %21 = arith.mulf %19, %20 : vector<16x1xf32>
    %22 = arith.mulf %15, %15 : vector<16x64xf32>
    %cst_13 = arith.constant dense<0.000000e+00> : vector<16xf32>
    %23 = vector.multi_reduction <add>, %22, %cst_13 [1] : vector<16x64xf32> to vector<16xf32>
    %24 = vector.shape_cast %23 : vector<16xf32> to vector<16x1xf32>
    %cst_14 = arith.constant 1.562500e-02 : f32
    %25 = vector.broadcast %cst_14 : f32 to vector<16x1xf32>
    %26 = arith.mulf %24, %25 : vector<16x1xf32>
    %27 = arith.mulf %21, %21 : vector<16x1xf32>
    %28 = arith.subf %26, %27 : vector<16x1xf32>
    %29 = vector.broadcast %21 : vector<16x1xf32> to vector<16x64xf32>
    %30 = arith.subf %15, %29 : vector<16x64xf32>
    %cst_15 = arith.constant 9.99999996E-13 : f32
    %31 = vector.broadcast %cst_15 : f32 to vector<16x1xf32>
    %32 = arith.addf %28, %31 : vector<16x1xf32>
    %33 = math.rsqrt %32 : vector<16x1xf32>
    %34 = vector.broadcast %33 : vector<16x1xf32> to vector<16x64xf32>
    %35 = arith.mulf %30, %34 : vector<16x64xf32>
    %36 = vector.broadcast %16 : vector<1x64xf32> to vector<16x64xf32>
    %37 = arith.mulf %35, %36 : vector<16x64xf32>
    %38 = vector.broadcast %17 : vector<1x64xf32> to vector<16x64xf32>
    %39 = arith.addf %37, %38 : vector<16x64xf32>
    %c0_16 = arith.constant 0 : index
    %c0_17 = arith.constant 0 : index
    %c0_18 = arith.constant 0 : index
    %40 = vector.load %arg1[%c0_16, %c0_17, %c0_18] : memref<2x1x8xi32, #tpu.memory_space<vmem>>, vector<2x1x8xi32>
    %41 = arith.sitofp %40 : vector<2x1x8xi32> to vector<2x1x8xf32>
    %cst_19 = arith.constant 1.000000e+00 : f32
    %42 = vector.broadcast %cst_19 : f32 to vector<2x1x8xf32>
    %43 = arith.subf %41, %42 : vector<2x1x8xf32>
    %cst_20 = arith.constant 1.000000e+09 : f32
    %44 = vector.broadcast %cst_20 : f32 to vector<2x1x8xf32>
    %45 = arith.mulf %43, %44 : vector<2x1x8xf32>
    %46 = vector.shape_cast %45 : vector<2x1x8xf32> to vector<1x2x1x8xf32>
    %47 = vector.shape_cast %46 : vector<1x2x1x8xf32> to vector<1x2x1x8xf32>
    %48 = vector.broadcast %47 : vector<1x2x1x8xf32> to vector<2x2x1x8xf32>
    %49 = vector.shape_cast %48 : vector<2x2x1x8xf32> to vector<4x1x8xf32>
    %50 = arith.truncf %39 : vector<16x64xf32> to vector<16x64xbf16>
    %c0_21 = arith.constant 0 : index
    %c0_22 = arith.constant 0 : index
    %c0_23 = arith.constant 0 : index
    %c0_24 = arith.constant 0 : index
    %51 = vector.load %arg6[%c0_21, %c0_22, %c0_23, %c0_24] : memref<2x2x64x384xbf16, #tpu.memory_space<vmem>>, vector<1x1x64x384xbf16>
    %52 = vector.shape_cast %51 : vector<1x1x64x384xbf16> to vector<64x384xbf16>
    %cst_25 = arith.constant dense<0.000000e+00> : vector<16x384xf32>
    %53 = tpu.matmul %50, %52, %cst_25 {dimension_numbers = #tpu.dot_dimension_numbers<[1], [0], [0], [1], [0, 0, 1, 1], [], []>} : vector<16x64xbf16>, vector<64x384xbf16>, vector<16x384xf32> -> vector<16x384xf32>
    %c0_26 = arith.constant 0 : index
    %c0_27 = arith.constant 0 : index
    %c0_28 = arith.constant 0 : index
    %c0_29 = arith.constant 0 : index
    %54 = vector.load %arg7[%c0_26, %c0_27, %c0_28, %c0_29] : memref<2x2x1x384xf32, #tpu.memory_space<vmem>>, vector<1x1x1x384xf32>
    %55 = vector.shape_cast %54 : vector<1x1x1x384xf32> to vector<1x384xf32>
    %56 = vector.broadcast %55 : vector<1x384xf32> to vector<16x384xf32>
    %57 = arith.addf %53, %56 : vector<16x384xf32>
    %58 = vector.extract_strided_slice %57 {offsets = [0, 0], sizes = [16, 128], strides = [1, 1]} : vector<16x384xf32> to vector<16x128xf32>
    %59 = vector.shape_cast %58 : vector<16x128xf32> to vector<2x8x128xf32>
    %60 = vector.extract_strided_slice %57 {offsets = [0, 128], sizes = [16, 128], strides = [1, 1]} : vector<16x384xf32> to vector<16x128xf32>
    %61 = vector.shape_cast %60 : vector<16x128xf32> to vector<2x8x128xf32>
    %62 = vector.extract_strided_slice %57 {offsets = [0, 256], sizes = [16, 128], strides = [1, 1]} : vector<16x384xf32> to vector<16x128xf32>
    %63 = vector.shape_cast %62 : vector<16x128xf32> to vector<2x8x128xf32>
    %c0_30 = arith.constant 0 : index
    %c1 = arith.constant 1 : index
    %c0_31 = arith.constant 0 : index
    %c0_32 = arith.constant 0 : index
    %64 = vector.load %arg6[%c0_30, %c1, %c0_31, %c0_32] : memref<2x2x64x384xbf16, #tpu.memory_space<vmem>>, vector<1x1x64x384xbf16>
    %65 = vector.shape_cast %64 : vector<1x1x64x384xbf16> to vector<64x384xbf16>
    %cst_33 = arith.constant dense<0.000000e+00> : vector<16x384xf32>
    %66 = tpu.matmul %50, %65, %cst_33 {dimension_numbers = #tpu.dot_dimension_numbers<[1], [0], [0], [1], [0, 0, 1, 1], [], []>} : vector<16x64xbf16>, vector<64x384xbf16>, vector<16x384xf32> -> vector<16x384xf32>
    %c0_34 = arith.constant 0 : index
    %c1_35 = arith.constant 1 : index
    %c0_36 = arith.constant 0 : index
    %c0_37 = arith.constant 0 : index
    %67 = vector.load %arg7[%c0_34, %c1_35, %c0_36, %c0_37] : memref<2x2x1x384xf32, #tpu.memory_space<vmem>>, vector<1x1x1x384xf32>
    %68 = vector.shape_cast %67 : vector<1x1x1x384xf32> to vector<1x384xf32>
    %69 = vector.broadcast %68 : vector<1x384xf32> to vector<16x384xf32>
    %70 = arith.addf %66, %69 : vector<16x384xf32>
    %71 = vector.extract_strided_slice %70 {offsets = [0, 0], sizes = [16, 128], strides = [1, 1]} : vector<16x384xf32> to vector<16x128xf32>
    %72 = vector.shape_cast %71 : vector<16x128xf32> to vector<2x8x128xf32>
    %73 = vector.extract_strided_slice %70 {offsets = [0, 128], sizes = [16, 128], strides = [1, 1]} : vector<16x384xf32> to vector<16x128xf32>
    %74 = vector.shape_cast %73 : vector<16x128xf32> to vector<2x8x128xf32>
    %75 = vector.extract_strided_slice %70 {offsets = [0, 256], sizes = [16, 128], strides = [1, 1]} : vector<16x384xf32> to vector<16x128xf32>
    %76 = vector.shape_cast %75 : vector<16x128xf32> to vector<2x8x128xf32>
    %77 = tpu.concatenate %59, %72 in 0 : vector<2x8x128xf32>, vector<2x8x128xf32> -> vector<4x8x128xf32>
    %78 = tpu.concatenate %61, %74 in 0 : vector<2x8x128xf32>, vector<2x8x128xf32> -> vector<4x8x128xf32>
    %79 = tpu.concatenate %63, %76 in 0 : vector<2x8x128xf32>, vector<2x8x128xf32> -> vector<4x8x128xf32>
    %80 = arith.truncf %77 : vector<4x8x128xf32> to vector<4x8x128xbf16>
    %81 = arith.truncf %78 : vector<4x8x128xf32> to vector<4x8x128xbf16>
    "tpu.trace_start"() <{level = 10 : i32, message = "bqd,bkd->bqk"}> : () -> ()
    %cst_38 = arith.constant dense<0.000000e+00> : vector<4x8x8xf32>
    %82 = tpu.matmul %80, %81, %cst_38 {dimension_numbers = #tpu.dot_dimension_numbers<[2], [2], [1], [1], [0, 0, 0, 1, 1, 1], [0], [0]>} : vector<4x8x128xbf16>, vector<4x8x128xbf16>, vector<4x8x8xf32> -> vector<4x8x8xf32>
    "tpu.trace_stop"() : () -> ()
    %83 = vector.broadcast %49 : vector<4x1x8xf32> to vector<4x8x8xf32>
    %84 = arith.addf %82, %83 : vector<4x8x8xf32>
    %cst_39 = arith.constant dense<0xFF800000> : vector<4x8xf32>
    %85 = vector.multi_reduction <maximumf>, %84, %cst_39 [2] : vector<4x8x8xf32> to vector<4x8xf32>
    %86 = vector.shape_cast %85 : vector<4x8xf32> to vector<4x8x1xf32>
    %87 = vector.broadcast %86 : vector<4x8x1xf32> to vector<4x8x8xf32>
    %88 = arith.subf %84, %87 : vector<4x8x8xf32>
    %89 = math.exp %88 : vector<4x8x8xf32>
    %cst_40 = arith.constant dense<0.000000e+00> : vector<4x8xf32>
    %90 = vector.multi_reduction <add>, %89, %cst_40 [2] : vector<4x8x8xf32> to vector<4x8xf32>
    %91 = vector.shape_cast %90 : vector<4x8xf32> to vector<4x8x1xf32>
    %92 = tpu.reciprocal %91 {approx = true} : vector<4x8x1xf32> -> vector<4x8x1xf32>
    %93 = vector.broadcast %92 : vector<4x8x1xf32> to vector<4x8x8xf32>
    %94 = arith.mulf %89, %93 : vector<4x8x8xf32>
    %95 = arith.truncf %94 : vector<4x8x8xf32> to vector<4x8x8xbf16>
    %96 = arith.truncf %79 : vector<4x8x128xf32> to vector<4x8x128xbf16>
    "tpu.trace_start"() <{level = 10 : i32, message = "bqk,bkd->bqd"}> : () -> ()
    %cst_41 = arith.constant dense<0.000000e+00> : vector<4x8x128xf32>
    %97 = tpu.matmul %95, %96, %cst_41 {dimension_numbers = #tpu.dot_dimension_numbers<[2], [1], [1], [2], [0, 0, 0, 1, 1, 2], [0], [0]>} : vector<4x8x8xbf16>, vector<4x8x128xbf16>, vector<4x8x128xf32> -> vector<4x8x128xf32>
    "tpu.trace_stop"() : () -> ()
    %c0_42 = arith.constant 0 : index
    %c0_43 = arith.constant 0 : index
    %c0_44 = arith.constant 0 : index
    %98 = vector.load %arg9[%c0_42, %c0_43, %c0_44] : memref<2x1x64xf32, #tpu.memory_space<vmem>>, vector<1x1x64xf32>
    %99 = vector.shape_cast %98 : vector<1x1x64xf32> to vector<1x64xf32>
    %100 = vector.extract_strided_slice %97 {offsets = [0, 0, 0], sizes = [2, 8, 128], strides = [1, 1, 1]} : vector<4x8x128xf32> to vector<2x8x128xf32>
    %101 = vector.shape_cast %100 : vector<2x8x128xf32> to vector<16x128xf32>
    %c0_45 = arith.constant 0 : index
    %c0_46 = arith.constant 0 : index
    %c0_47 = arith.constant 0 : index
    %c0_48 = arith.constant 0 : index
    %102 = vector.load %arg8[%c0_45, %c0_46, %c0_47, %c0_48] : memref<2x2x128x64xbf16, #tpu.memory_space<vmem>>, vector<1x1x128x64xbf16>
    %103 = vector.shape_cast %102 : vector<1x1x128x64xbf16> to vector<128x64xbf16>
    %104 = arith.truncf %101 : vector<16x128xf32> to vector<16x128xbf16>
    %cst_49 = arith.constant dense<0.000000e+00> : vector<16x64xf32>
    %105 = tpu.matmul %104, %103, %cst_49 {dimension_numbers = #tpu.dot_dimension_numbers<[1], [0], [0], [1], [0, 0, 1, 1], [], []>} : vector<16x128xbf16>, vector<128x64xbf16>, vector<16x64xf32> -> vector<16x64xf32>
    %106 = vector.broadcast %99 : vector<1x64xf32> to vector<16x64xf32>
    %107 = arith.addf %106, %105 : vector<16x64xf32>
    %108 = vector.extract_strided_slice %97 {offsets = [2, 0, 0], sizes = [2, 8, 128], strides = [1, 1, 1]} : vector<4x8x128xf32> to vector<2x8x128xf32>
    %109 = vector.shape_cast %108 : vector<2x8x128xf32> to vector<16x128xf32>
    %c0_50 = arith.constant 0 : index
    %c1_51 = arith.constant 1 : index
    %c0_52 = arith.constant 0 : index
    %c0_53 = arith.constant 0 : index
    %110 = vector.load %arg8[%c0_50, %c1_51, %c0_52, %c0_53] : memref<2x2x128x64xbf16, #tpu.memory_space<vmem>>, vector<1x1x128x64xbf16>
    %111 = vector.shape_cast %110 : vector<1x1x128x64xbf16> to vector<128x64xbf16>
    %112 = arith.truncf %109 : vector<16x128xf32> to vector<16x128xbf16>
    %cst_54 = arith.constant dense<0.000000e+00> : vector<16x64xf32>
    %113 = tpu.matmul %112, %111, %cst_54 {dimension_numbers = #tpu.dot_dimension_numbers<[1], [0], [0], [1], [0, 0, 1, 1], [], []>} : vector<16x128xbf16>, vector<128x64xbf16>, vector<16x64xf32> -> vector<16x64xf32>
    %114 = arith.addf %107, %113 : vector<16x64xf32>
    %115 = arith.addf %39, %114 : vector<16x64xf32>
    %c0_55 = arith.constant 0 : index
    %c0_56 = arith.constant 0 : index
    %c0_57 = arith.constant 0 : index
    %116 = vector.load %arg10[%c0_55, %c0_56, %c0_57] : memref<2x1x64xf32, #tpu.memory_space<vmem>>, vector<1x1x64xf32>
    %117 = vector.shape_cast %116 : vector<1x1x64xf32> to vector<1x64xf32>
    %c0_58 = arith.constant 0 : index
    %c0_59 = arith.constant 0 : index
    %c0_60 = arith.constant 0 : index
    %118 = vector.load %arg11[%c0_58, %c0_59, %c0_60] : memref<2x1x64xf32, #tpu.memory_space<vmem>>, vector<1x1x64xf32>
    %119 = vector.shape_cast %118 : vector<1x1x64xf32> to vector<1x64xf32>
    %cst_61 = arith.constant dense<0.000000e+00> : vector<16xf32>
    %120 = vector.multi_reduction <add>, %115, %cst_61 [1] : vector<16x64xf32> to vector<16xf32>
    %121 = vector.shape_cast %120 : vector<16xf32> to vector<16x1xf32>
    %cst_62 = arith.constant 1.562500e-02 : f32
    %122 = vector.broadcast %cst_62 : f32 to vector<16x1xf32>
    %123 = arith.mulf %121, %122 : vector<16x1xf32>
    %124 = arith.mulf %115, %115 : vector<16x64xf32>
    %cst_63 = arith.constant dense<0.000000e+00> : vector<16xf32>
    %125 = vector.multi_reduction <add>, %124, %cst_63 [1] : vector<16x64xf32> to vector<16xf32>
    %126 = vector.shape_cast %125 : vector<16xf32> to vector<16x1xf32>
    %cst_64 = arith.constant 1.562500e-02 : f32
    %127 = vector.broadcast %cst_64 : f32 to vector<16x1xf32>
    %128 = arith.mulf %126, %127 : vector<16x1xf32>
    %129 = arith.mulf %123, %123 : vector<16x1xf32>
    %130 = arith.subf %128, %129 : vector<16x1xf32>
    %131 = vector.broadcast %123 : vector<16x1xf32> to vector<16x64xf32>
    %132 = arith.subf %115, %131 : vector<16x64xf32>
    %cst_65 = arith.constant 9.99999996E-13 : f32
    %133 = vector.broadcast %cst_65 : f32 to vector<16x1xf32>
    %134 = arith.addf %130, %133 : vector<16x1xf32>
    %135 = math.rsqrt %134 : vector<16x1xf32>
    %136 = vector.broadcast %135 : vector<16x1xf32> to vector<16x64xf32>
    %137 = arith.mulf %132, %136 : vector<16x64xf32>
    %138 = vector.broadcast %117 : vector<1x64xf32> to vector<16x64xf32>
    %139 = arith.mulf %137, %138 : vector<16x64xf32>
    %140 = vector.broadcast %119 : vector<1x64xf32> to vector<16x64xf32>
    %141 = arith.addf %139, %140 : vector<16x64xf32>
    %c0_66 = arith.constant 0 : index
    %c0_67 = arith.constant 0 : index
    %c0_68 = arith.constant 0 : index
    %142 = vector.load %arg12[%c0_66, %c0_67, %c0_68] : memref<2x64x256xbf16, #tpu.memory_space<vmem>>, vector<1x64x256xbf16>
    %143 = vector.shape_cast %142 : vector<1x64x256xbf16> to vector<64x256xbf16>
    %144 = arith.truncf %141 : vector<16x64xf32> to vector<16x64xbf16>
    %cst_69 = arith.constant dense<0.000000e+00> : vector<16x256xf32>
    %145 = tpu.matmul %144, %143, %cst_69 {dimension_numbers = #tpu.dot_dimension_numbers<[1], [0], [0], [1], [0, 0, 1, 1], [], []>} : vector<16x64xbf16>, vector<64x256xbf16>, vector<16x256xf32> -> vector<16x256xf32>
    %c0_70 = arith.constant 0 : index
    %c0_71 = arith.constant 0 : index
    %c0_72 = arith.constant 0 : index
    %146 = vector.load %arg13[%c0_70, %c0_71, %c0_72] : memref<2x1x256xf32, #tpu.memory_space<vmem>>, vector<1x1x256xf32>
    %147 = vector.shape_cast %146 : vector<1x1x256xf32> to vector<1x256xf32>
    %148 = vector.broadcast %147 : vector<1x256xf32> to vector<16x256xf32>
    %149 = arith.addf %145, %148 : vector<16x256xf32>
    %cst_73 = arith.constant 5.000000e-01 : f32
    %150 = vector.broadcast %cst_73 : f32 to vector<16x256xf32>
    %151 = arith.mulf %150, %149 : vector<16x256xf32>
    %cst_74 = arith.constant 4.471500e-02 : f32
    %152 = vector.broadcast %cst_74 : f32 to vector<16x256xf32>
    %153 = arith.mulf %152, %149 : vector<16x256xf32>
    %154 = arith.mulf %153, %149 : vector<16x256xf32>
    %155 = arith.mulf %154, %149 : vector<16x256xf32>
    %156 = arith.addf %149, %155 : vector<16x256xf32>
    %cst_75 = arith.constant 0.797884583 : f32
    %157 = vector.broadcast %cst_75 : f32 to vector<16x256xf32>
    %158 = arith.mulf %157, %156 : vector<16x256xf32>
    %159 = math.tanh %158 : vector<16x256xf32>
    %cst_76 = arith.constant 1.000000e+00 : f32
    %160 = vector.broadcast %cst_76 : f32 to vector<16x256xf32>
    %161 = arith.addf %160, %159 : vector<16x256xf32>
    %162 = arith.mulf %151, %161 : vector<16x256xf32>
    %c0_77 = arith.constant 0 : index
    %c0_78 = arith.constant 0 : index
    %c0_79 = arith.constant 0 : index
    %163 = vector.load %arg14[%c0_77, %c0_78, %c0_79] : memref<2x256x64xbf16, #tpu.memory_space<vmem>>, vector<1x256x64xbf16>
    %164 = vector.shape_cast %163 : vector<1x256x64xbf16> to vector<256x64xbf16>
    %165 = arith.truncf %162 : vector<16x256xf32> to vector<16x256xbf16>
    %cst_80 = arith.constant dense<0.000000e+00> : vector<16x64xf32>
    %166 = tpu.matmul %165, %164, %cst_80 {dimension_numbers = #tpu.dot_dimension_numbers<[1], [0], [0], [1], [0, 0, 1, 1], [], []>} : vector<16x256xbf16>, vector<256x64xbf16>, vector<16x64xf32> -> vector<16x64xf32>
    %c0_81 = arith.constant 0 : index
    %c0_82 = arith.constant 0 : index
    %c0_83 = arith.constant 0 : index
    %167 = vector.load %arg15[%c0_81, %c0_82, %c0_83] : memref<2x1x64xf32, #tpu.memory_space<vmem>>, vector<1x1x64xf32>
    %168 = vector.shape_cast %167 : vector<1x1x64xf32> to vector<1x64xf32>
    %169 = vector.broadcast %168 : vector<1x64xf32> to vector<16x64xf32>
    %170 = arith.addf %166, %169 : vector<16x64xf32>
    %171 = arith.addf %141, %170 : vector<16x64xf32>
    %c0_84 = arith.constant 0 : index
    %c0_85 = arith.constant 0 : index
    %c0_86 = arith.constant 0 : index
    %172 = vector.load %arg16[%c0_84, %c0_85, %c0_86] : memref<2x1x64xf32, #tpu.memory_space<vmem>>, vector<1x1x64xf32>
    %173 = vector.shape_cast %172 : vector<1x1x64xf32> to vector<1x64xf32>
    %c0_87 = arith.constant 0 : index
    %c0_88 = arith.constant 0 : index
    %c0_89 = arith.constant 0 : index
    %174 = vector.load %arg17[%c0_87, %c0_88, %c0_89] : memref<2x1x64xf32, #tpu.memory_space<vmem>>, vector<1x1x64xf32>
    %175 = vector.shape_cast %174 : vector<1x1x64xf32> to vector<1x64xf32>
    %cst_90 = arith.constant dense<0.000000e+00> : vector<16xf32>
    %176 = vector.multi_reduction <add>, %171, %cst_90 [1] : vector<16x64xf32> to vector<16xf32>
    %177 = vector.shape_cast %176 : vector<16xf32> to vector<16x1xf32>
    %cst_91 = arith.constant 1.562500e-02 : f32
    %178 = vector.broadcast %cst_91 : f32 to vector<16x1xf32>
    %179 = arith.mulf %177, %178 : vector<16x1xf32>
    %180 = arith.mulf %171, %171 : vector<16x64xf32>
    %cst_92 = arith.constant dense<0.000000e+00> : vector<16xf32>
    %181 = vector.multi_reduction <add>, %180, %cst_92 [1] : vector<16x64xf32> to vector<16xf32>
    %182 = vector.shape_cast %181 : vector<16xf32> to vector<16x1xf32>
    %cst_93 = arith.constant 1.562500e-02 : f32
    %183 = vector.broadcast %cst_93 : f32 to vector<16x1xf32>
    %184 = arith.mulf %182, %183 : vector<16x1xf32>
    %185 = arith.mulf %179, %179 : vector<16x1xf32>
    %186 = arith.subf %184, %185 : vector<16x1xf32>
    %187 = vector.broadcast %179 : vector<16x1xf32> to vector<16x64xf32>
    %188 = arith.subf %171, %187 : vector<16x64xf32>
    %cst_94 = arith.constant 9.99999996E-13 : f32
    %189 = vector.broadcast %cst_94 : f32 to vector<16x1xf32>
    %190 = arith.addf %186, %189 : vector<16x1xf32>
    %191 = math.rsqrt %190 : vector<16x1xf32>
    %192 = vector.broadcast %191 : vector<16x1xf32> to vector<16x64xf32>
    %193 = arith.mulf %188, %192 : vector<16x64xf32>
    %194 = vector.broadcast %173 : vector<1x64xf32> to vector<16x64xf32>
    %195 = arith.mulf %193, %194 : vector<16x64xf32>
    %196 = vector.broadcast %175 : vector<1x64xf32> to vector<16x64xf32>
    %197 = arith.addf %195, %196 : vector<16x64xf32>
    %198 = arith.truncf %197 : vector<16x64xf32> to vector<16x64xbf16>
    %c1_95 = arith.constant 1 : index
    %c0_96 = arith.constant 0 : index
    %c0_97 = arith.constant 0 : index
    %c0_98 = arith.constant 0 : index
    %199 = vector.load %arg6[%c1_95, %c0_96, %c0_97, %c0_98] : memref<2x2x64x384xbf16, #tpu.memory_space<vmem>>, vector<1x1x64x384xbf16>
    %200 = vector.shape_cast %199 : vector<1x1x64x384xbf16> to vector<64x384xbf16>
    %cst_99 = arith.constant dense<0.000000e+00> : vector<16x384xf32>
    %201 = tpu.matmul %198, %200, %cst_99 {dimension_numbers = #tpu.dot_dimension_numbers<[1], [0], [0], [1], [0, 0, 1, 1], [], []>} : vector<16x64xbf16>, vector<64x384xbf16>, vector<16x384xf32> -> vector<16x384xf32>
    %c1_100 = arith.constant 1 : index
    %c0_101 = arith.constant 0 : index
    %c0_102 = arith.constant 0 : index
    %c0_103 = arith.constant 0 : index
    %202 = vector.load %arg7[%c1_100, %c0_101, %c0_102, %c0_103] : memref<2x2x1x384xf32, #tpu.memory_space<vmem>>, vector<1x1x1x384xf32>
    %203 = vector.shape_cast %202 : vector<1x1x1x384xf32> to vector<1x384xf32>
    %204 = vector.broadcast %203 : vector<1x384xf32> to vector<16x384xf32>
    %205 = arith.addf %201, %204 : vector<16x384xf32>
    %206 = vector.extract_strided_slice %205 {offsets = [0, 0], sizes = [16, 128], strides = [1, 1]} : vector<16x384xf32> to vector<16x128xf32>
    %207 = vector.shape_cast %206 : vector<16x128xf32> to vector<2x8x128xf32>
    %208 = vector.extract_strided_slice %205 {offsets = [0, 128], sizes = [16, 128], strides = [1, 1]} : vector<16x384xf32> to vector<16x128xf32>
    %209 = vector.shape_cast %208 : vector<16x128xf32> to vector<2x8x128xf32>
    %210 = vector.extract_strided_slice %205 {offsets = [0, 256], sizes = [16, 128], strides = [1, 1]} : vector<16x384xf32> to vector<16x128xf32>
    %211 = vector.shape_cast %210 : vector<16x128xf32> to vector<2x8x128xf32>
    %c1_104 = arith.constant 1 : index
    %c1_105 = arith.constant 1 : index
    %c0_106 = arith.constant 0 : index
    %c0_107 = arith.constant 0 : index
    %212 = vector.load %arg6[%c1_104, %c1_105, %c0_106, %c0_107] : memref<2x2x64x384xbf16, #tpu.memory_space<vmem>>, vector<1x1x64x384xbf16>
    %213 = vector.shape_cast %212 : vector<1x1x64x384xbf16> to vector<64x384xbf16>
    %cst_108 = arith.constant dense<0.000000e+00> : vector<16x384xf32>
    %214 = tpu.matmul %198, %213, %cst_108 {dimension_numbers = #tpu.dot_dimension_numbers<[1], [0], [0], [1], [0, 0, 1, 1], [], []>} : vector<16x64xbf16>, vector<64x384xbf16>, vector<16x384xf32> -> vector<16x384xf32>
    %c1_109 = arith.constant 1 : index
    %c1_110 = arith.constant 1 : index
    %c0_111 = arith.constant 0 : index
    %c0_112 = arith.constant 0 : index
    %215 = vector.load %arg7[%c1_109, %c1_110, %c0_111, %c0_112] : memref<2x2x1x384xf32, #tpu.memory_space<vmem>>, vector<1x1x1x384xf32>
    %216 = vector.shape_cast %215 : vector<1x1x1x384xf32> to vector<1x384xf32>
    %217 = vector.broadcast %216 : vector<1x384xf32> to vector<16x384xf32>
    %218 = arith.addf %214, %217 : vector<16x384xf32>
    %219 = vector.extract_strided_slice %218 {offsets = [0, 0], sizes = [16, 128], strides = [1, 1]} : vector<16x384xf32> to vector<16x128xf32>
    %220 = vector.shape_cast %219 : vector<16x128xf32> to vector<2x8x128xf32>
    %221 = vector.extract_strided_slice %218 {offsets = [0, 128], sizes = [16, 128], strides = [1, 1]} : vector<16x384xf32> to vector<16x128xf32>
    %222 = vector.shape_cast %221 : vector<16x128xf32> to vector<2x8x128xf32>
    %223 = vector.extract_strided_slice %218 {offsets = [0, 256], sizes = [16, 128], strides = [1, 1]} : vector<16x384xf32> to vector<16x128xf32>
    %224 = vector.shape_cast %223 : vector<16x128xf32> to vector<2x8x128xf32>
    %225 = tpu.concatenate %207, %220 in 0 : vector<2x8x128xf32>, vector<2x8x128xf32> -> vector<4x8x128xf32>
    %226 = tpu.concatenate %209, %222 in 0 : vector<2x8x128xf32>, vector<2x8x128xf32> -> vector<4x8x128xf32>
    %227 = tpu.concatenate %211, %224 in 0 : vector<2x8x128xf32>, vector<2x8x128xf32> -> vector<4x8x128xf32>
    %228 = arith.truncf %225 : vector<4x8x128xf32> to vector<4x8x128xbf16>
    %229 = arith.truncf %226 : vector<4x8x128xf32> to vector<4x8x128xbf16>
    "tpu.trace_start"() <{level = 10 : i32, message = "bqd,bkd->bqk"}> : () -> ()
    %cst_113 = arith.constant dense<0.000000e+00> : vector<4x8x8xf32>
    %230 = tpu.matmul %228, %229, %cst_113 {dimension_numbers = #tpu.dot_dimension_numbers<[2], [2], [1], [1], [0, 0, 0, 1, 1, 1], [0], [0]>} : vector<4x8x128xbf16>, vector<4x8x128xbf16>, vector<4x8x8xf32> -> vector<4x8x8xf32>
    "tpu.trace_stop"() : () -> ()
    %231 = vector.broadcast %49 : vector<4x1x8xf32> to vector<4x8x8xf32>
    %232 = arith.addf %230, %231 : vector<4x8x8xf32>
    %cst_114 = arith.constant dense<0xFF800000> : vector<4x8xf32>
    %233 = vector.multi_reduction <maximumf>, %232, %cst_114 [2] : vector<4x8x8xf32> to vector<4x8xf32>
    %234 = vector.shape_cast %233 : vector<4x8xf32> to vector<4x8x1xf32>
    %235 = vector.broadcast %234 : vector<4x8x1xf32> to vector<4x8x8xf32>
    %236 = arith.subf %232, %235 : vector<4x8x8xf32>
    %237 = math.exp %236 : vector<4x8x8xf32>
    %cst_115 = arith.constant dense<0.000000e+00> : vector<4x8xf32>
    %238 = vector.multi_reduction <add>, %237, %cst_115 [2] : vector<4x8x8xf32> to vector<4x8xf32>
    %239 = vector.shape_cast %238 : vector<4x8xf32> to vector<4x8x1xf32>
    %240 = tpu.reciprocal %239 {approx = true} : vector<4x8x1xf32> -> vector<4x8x1xf32>
    %241 = vector.broadcast %240 : vector<4x8x1xf32> to vector<4x8x8xf32>
    %242 = arith.mulf %237, %241 : vector<4x8x8xf32>
    %243 = arith.truncf %242 : vector<4x8x8xf32> to vector<4x8x8xbf16>
    %244 = arith.truncf %227 : vector<4x8x128xf32> to vector<4x8x128xbf16>
    "tpu.trace_start"() <{level = 10 : i32, message = "bqk,bkd->bqd"}> : () -> ()
    %cst_116 = arith.constant dense<0.000000e+00> : vector<4x8x128xf32>
    %245 = tpu.matmul %243, %244, %cst_116 {dimension_numbers = #tpu.dot_dimension_numbers<[2], [1], [1], [2], [0, 0, 0, 1, 1, 2], [0], [0]>} : vector<4x8x8xbf16>, vector<4x8x128xbf16>, vector<4x8x128xf32> -> vector<4x8x128xf32>
    "tpu.trace_stop"() : () -> ()
    %c1_117 = arith.constant 1 : index
    %c0_118 = arith.constant 0 : index
    %c0_119 = arith.constant 0 : index
    %246 = vector.load %arg9[%c1_117, %c0_118, %c0_119] : memref<2x1x64xf32, #tpu.memory_space<vmem>>, vector<1x1x64xf32>
    %247 = vector.shape_cast %246 : vector<1x1x64xf32> to vector<1x64xf32>
    %248 = vector.extract_strided_slice %245 {offsets = [0, 0, 0], sizes = [2, 8, 128], strides = [1, 1, 1]} : vector<4x8x128xf32> to vector<2x8x128xf32>
    %249 = vector.shape_cast %248 : vector<2x8x128xf32> to vector<16x128xf32>
    %c1_120 = arith.constant 1 : index
    %c0_121 = arith.constant 0 : index
    %c0_122 = arith.constant 0 : index
    %c0_123 = arith.constant 0 : index
    %250 = vector.load %arg8[%c1_120, %c0_121, %c0_122, %c0_123] : memref<2x2x128x64xbf16, #tpu.memory_space<vmem>>, vector<1x1x128x64xbf16>
    %251 = vector.shape_cast %250 : vector<1x1x128x64xbf16> to vector<128x64xbf16>
    %252 = arith.truncf %249 : vector<16x128xf32> to vector<16x128xbf16>
    %cst_124 = arith.constant dense<0.000000e+00> : vector<16x64xf32>
    %253 = tpu.matmul %252, %251, %cst_124 {dimension_numbers = #tpu.dot_dimension_numbers<[1], [0], [0], [1], [0, 0, 1, 1], [], []>} : vector<16x128xbf16>, vector<128x64xbf16>, vector<16x64xf32> -> vector<16x64xf32>
    %254 = vector.broadcast %247 : vector<1x64xf32> to vector<16x64xf32>
    %255 = arith.addf %254, %253 : vector<16x64xf32>
    %256 = vector.extract_strided_slice %245 {offsets = [2, 0, 0], sizes = [2, 8, 128], strides = [1, 1, 1]} : vector<4x8x128xf32> to vector<2x8x128xf32>
    %257 = vector.shape_cast %256 : vector<2x8x128xf32> to vector<16x128xf32>
    %c1_125 = arith.constant 1 : index
    %c1_126 = arith.constant 1 : index
    %c0_127 = arith.constant 0 : index
    %c0_128 = arith.constant 0 : index
    %258 = vector.load %arg8[%c1_125, %c1_126, %c0_127, %c0_128] : memref<2x2x128x64xbf16, #tpu.memory_space<vmem>>, vector<1x1x128x64xbf16>
    %259 = vector.shape_cast %258 : vector<1x1x128x64xbf16> to vector<128x64xbf16>
    %260 = arith.truncf %257 : vector<16x128xf32> to vector<16x128xbf16>
    %cst_129 = arith.constant dense<0.000000e+00> : vector<16x64xf32>
    %261 = tpu.matmul %260, %259, %cst_129 {dimension_numbers = #tpu.dot_dimension_numbers<[1], [0], [0], [1], [0, 0, 1, 1], [], []>} : vector<16x128xbf16>, vector<128x64xbf16>, vector<16x64xf32> -> vector<16x64xf32>
    %262 = arith.addf %255, %261 : vector<16x64xf32>
    %263 = arith.addf %197, %262 : vector<16x64xf32>
    %c1_130 = arith.constant 1 : index
    %c0_131 = arith.constant 0 : index
    %c0_132 = arith.constant 0 : index
    %264 = vector.load %arg10[%c1_130, %c0_131, %c0_132] : memref<2x1x64xf32, #tpu.memory_space<vmem>>, vector<1x1x64xf32>
    %265 = vector.shape_cast %264 : vector<1x1x64xf32> to vector<1x64xf32>
    %c1_133 = arith.constant 1 : index
    %c0_134 = arith.constant 0 : index
    %c0_135 = arith.constant 0 : index
    %266 = vector.load %arg11[%c1_133, %c0_134, %c0_135] : memref<2x1x64xf32, #tpu.memory_space<vmem>>, vector<1x1x64xf32>
    %267 = vector.shape_cast %266 : vector<1x1x64xf32> to vector<1x64xf32>
    %cst_136 = arith.constant dense<0.000000e+00> : vector<16xf32>
    %268 = vector.multi_reduction <add>, %263, %cst_136 [1] : vector<16x64xf32> to vector<16xf32>
    %269 = vector.shape_cast %268 : vector<16xf32> to vector<16x1xf32>
    %cst_137 = arith.constant 1.562500e-02 : f32
    %270 = vector.broadcast %cst_137 : f32 to vector<16x1xf32>
    %271 = arith.mulf %269, %270 : vector<16x1xf32>
    %272 = arith.mulf %263, %263 : vector<16x64xf32>
    %cst_138 = arith.constant dense<0.000000e+00> : vector<16xf32>
    %273 = vector.multi_reduction <add>, %272, %cst_138 [1] : vector<16x64xf32> to vector<16xf32>
    %274 = vector.shape_cast %273 : vector<16xf32> to vector<16x1xf32>
    %cst_139 = arith.constant 1.562500e-02 : f32
    %275 = vector.broadcast %cst_139 : f32 to vector<16x1xf32>
    %276 = arith.mulf %274, %275 : vector<16x1xf32>
    %277 = arith.mulf %271, %271 : vector<16x1xf32>
    %278 = arith.subf %276, %277 : vector<16x1xf32>
    %279 = vector.broadcast %271 : vector<16x1xf32> to vector<16x64xf32>
    %280 = arith.subf %263, %279 : vector<16x64xf32>
    %cst_140 = arith.constant 9.99999996E-13 : f32
    %281 = vector.broadcast %cst_140 : f32 to vector<16x1xf32>
    %282 = arith.addf %278, %281 : vector<16x1xf32>
    %283 = math.rsqrt %282 : vector<16x1xf32>
    %284 = vector.broadcast %283 : vector<16x1xf32> to vector<16x64xf32>
    %285 = arith.mulf %280, %284 : vector<16x64xf32>
    %286 = vector.broadcast %265 : vector<1x64xf32> to vector<16x64xf32>
    %287 = arith.mulf %285, %286 : vector<16x64xf32>
    %288 = vector.broadcast %267 : vector<1x64xf32> to vector<16x64xf32>
    %289 = arith.addf %287, %288 : vector<16x64xf32>
    %c1_141 = arith.constant 1 : index
    %c0_142 = arith.constant 0 : index
    %c0_143 = arith.constant 0 : index
    %290 = vector.load %arg12[%c1_141, %c0_142, %c0_143] : memref<2x64x256xbf16, #tpu.memory_space<vmem>>, vector<1x64x256xbf16>
    %291 = vector.shape_cast %290 : vector<1x64x256xbf16> to vector<64x256xbf16>
    %292 = arith.truncf %289 : vector<16x64xf32> to vector<16x64xbf16>
    %cst_144 = arith.constant dense<0.000000e+00> : vector<16x256xf32>
    %293 = tpu.matmul %292, %291, %cst_144 {dimension_numbers = #tpu.dot_dimension_numbers<[1], [0], [0], [1], [0, 0, 1, 1], [], []>} : vector<16x64xbf16>, vector<64x256xbf16>, vector<16x256xf32> -> vector<16x256xf32>
    %c1_145 = arith.constant 1 : index
    %c0_146 = arith.constant 0 : index
    %c0_147 = arith.constant 0 : index
    %294 = vector.load %arg13[%c1_145, %c0_146, %c0_147] : memref<2x1x256xf32, #tpu.memory_space<vmem>>, vector<1x1x256xf32>
    %295 = vector.shape_cast %294 : vector<1x1x256xf32> to vector<1x256xf32>
    %296 = vector.broadcast %295 : vector<1x256xf32> to vector<16x256xf32>
    %297 = arith.addf %293, %296 : vector<16x256xf32>
    %cst_148 = arith.constant 5.000000e-01 : f32
    %298 = vector.broadcast %cst_148 : f32 to vector<16x256xf32>
    %299 = arith.mulf %298, %297 : vector<16x256xf32>
    %cst_149 = arith.constant 4.471500e-02 : f32
    %300 = vector.broadcast %cst_149 : f32 to vector<16x256xf32>
    %301 = arith.mulf %300, %297 : vector<16x256xf32>
    %302 = arith.mulf %301, %297 : vector<16x256xf32>
    %303 = arith.mulf %302, %297 : vector<16x256xf32>
    %304 = arith.addf %297, %303 : vector<16x256xf32>
    %cst_150 = arith.constant 0.797884583 : f32
    %305 = vector.broadcast %cst_150 : f32 to vector<16x256xf32>
    %306 = arith.mulf %305, %304 : vector<16x256xf32>
    %307 = math.tanh %306 : vector<16x256xf32>
    %cst_151 = arith.constant 1.000000e+00 : f32
    %308 = vector.broadcast %cst_151 : f32 to vector<16x256xf32>
    %309 = arith.addf %308, %307 : vector<16x256xf32>
    %310 = arith.mulf %299, %309 : vector<16x256xf32>
    %c1_152 = arith.constant 1 : index
    %c0_153 = arith.constant 0 : index
    %c0_154 = arith.constant 0 : index
    %311 = vector.load %arg14[%c1_152, %c0_153, %c0_154] : memref<2x256x64xbf16, #tpu.memory_space<vmem>>, vector<1x256x64xbf16>
    %312 = vector.shape_cast %311 : vector<1x256x64xbf16> to vector<256x64xbf16>
    %313 = arith.truncf %310 : vector<16x256xf32> to vector<16x256xbf16>
    %cst_155 = arith.constant dense<0.000000e+00> : vector<16x64xf32>
    %314 = tpu.matmul %313, %312, %cst_155 {dimension_numbers = #tpu.dot_dimension_numbers<[1], [0], [0], [1], [0, 0, 1, 1], [], []>} : vector<16x256xbf16>, vector<256x64xbf16>, vector<16x64xf32> -> vector<16x64xf32>
    %c1_156 = arith.constant 1 : index
    %c0_157 = arith.constant 0 : index
    %c0_158 = arith.constant 0 : index
    %315 = vector.load %arg15[%c1_156, %c0_157, %c0_158] : memref<2x1x64xf32, #tpu.memory_space<vmem>>, vector<1x1x64xf32>
    %316 = vector.shape_cast %315 : vector<1x1x64xf32> to vector<1x64xf32>
    %317 = vector.broadcast %316 : vector<1x64xf32> to vector<16x64xf32>
    %318 = arith.addf %314, %317 : vector<16x64xf32>
    %319 = arith.addf %289, %318 : vector<16x64xf32>
    %c1_159 = arith.constant 1 : index
    %c0_160 = arith.constant 0 : index
    %c0_161 = arith.constant 0 : index
    %320 = vector.load %arg16[%c1_159, %c0_160, %c0_161] : memref<2x1x64xf32, #tpu.memory_space<vmem>>, vector<1x1x64xf32>
    %321 = vector.shape_cast %320 : vector<1x1x64xf32> to vector<1x64xf32>
    %c1_162 = arith.constant 1 : index
    %c0_163 = arith.constant 0 : index
    %c0_164 = arith.constant 0 : index
    %322 = vector.load %arg17[%c1_162, %c0_163, %c0_164] : memref<2x1x64xf32, #tpu.memory_space<vmem>>, vector<1x1x64xf32>
    %323 = vector.shape_cast %322 : vector<1x1x64xf32> to vector<1x64xf32>
    %cst_165 = arith.constant dense<0.000000e+00> : vector<16xf32>
    %324 = vector.multi_reduction <add>, %319, %cst_165 [1] : vector<16x64xf32> to vector<16xf32>
    %325 = vector.shape_cast %324 : vector<16xf32> to vector<16x1xf32>
    %cst_166 = arith.constant 1.562500e-02 : f32
    %326 = vector.broadcast %cst_166 : f32 to vector<16x1xf32>
    %327 = arith.mulf %325, %326 : vector<16x1xf32>
    %328 = arith.mulf %319, %319 : vector<16x64xf32>
    %cst_167 = arith.constant dense<0.000000e+00> : vector<16xf32>
    %329 = vector.multi_reduction <add>, %328, %cst_167 [1] : vector<16x64xf32> to vector<16xf32>
    %330 = vector.shape_cast %329 : vector<16xf32> to vector<16x1xf32>
    %cst_168 = arith.constant 1.562500e-02 : f32
    %331 = vector.broadcast %cst_168 : f32 to vector<16x1xf32>
    %332 = arith.mulf %330, %331 : vector<16x1xf32>
    %333 = arith.mulf %327, %327 : vector<16x1xf32>
    %334 = arith.subf %332, %333 : vector<16x1xf32>
    %335 = vector.broadcast %327 : vector<16x1xf32> to vector<16x64xf32>
    %336 = arith.subf %319, %335 : vector<16x64xf32>
    %cst_169 = arith.constant 9.99999996E-13 : f32
    %337 = vector.broadcast %cst_169 : f32 to vector<16x1xf32>
    %338 = arith.addf %334, %337 : vector<16x1xf32>
    %339 = math.rsqrt %338 : vector<16x1xf32>
    %340 = vector.broadcast %339 : vector<16x1xf32> to vector<16x64xf32>
    %341 = arith.mulf %336, %340 : vector<16x64xf32>
    %342 = vector.broadcast %321 : vector<1x64xf32> to vector<16x64xf32>
    %343 = arith.mulf %341, %342 : vector<16x64xf32>
    %344 = vector.broadcast %323 : vector<1x64xf32> to vector<16x64xf32>
    %345 = arith.addf %343, %344 : vector<16x64xf32>
    %c0_170 = arith.constant 0 : index
    %c0_171 = arith.constant 0 : index
    %346 = vector.load %arg18[%c0_170, %c0_171] : memref<64x128xbf16, #tpu.memory_space<vmem>>, vector<64x128xbf16>
    %347 = arith.truncf %345 : vector<16x64xf32> to vector<16x64xbf16>
    %cst_172 = arith.constant dense<0.000000e+00> : vector<16x128xf32>
    %348 = tpu.matmul %347, %346, %cst_172 {dimension_numbers = #tpu.dot_dimension_numbers<[1], [0], [0], [1], [0, 0, 1, 1], [], []>} : vector<16x64xbf16>, vector<64x128xbf16>, vector<16x128xf32> -> vector<16x128xf32>
    %c0_173 = arith.constant 0 : index
    %c0_174 = arith.constant 0 : index
    %349 = vector.load %arg19[%c0_173, %c0_174] : memref<1x128xf32, #tpu.memory_space<vmem>>, vector<1x128xf32>
    %350 = vector.broadcast %349 : vector<1x128xf32> to vector<16x128xf32>
    %351 = arith.addf %348, %350 : vector<16x128xf32>
    %c0_175 = arith.constant 0 : index
    %c0_176 = arith.constant 0 : index
    %352 = vector.load %arg20[%c0_175, %c0_176] : memref<16x128xf32, #tpu.memory_space<vmem>>, vector<16x128xf32>
    tpu.vector_store %arg20[%c0_175, %c0_176], %351 {strides = array<i32>} : memref<16x128xf32, #tpu.memory_space<vmem>>, vector<16x128xf32>,
    return
  }
}

</mosaic_0001>

<bundles_post_ra>
// kernel: dbert_forward.1
= control target key start
LH: loop header
LB: loop body
LE: loop exit
PB: predicated region body
PF: predicated region fallthrough
CT: control target
= control target key end

     0   :  { %v3330_v0 = vmov 0   ;;  %v68_v12 = vlaneseq  ;;  %v3331_v15 = vmov 1.0|1.0   ;;  %vm164_vm3 = vcmask 523264   ;;  %s4324_s0 = inlined_call_operand.vmem [shape: s32[16,1], index: 0, kind: input, shape index: {}]   ;;  %s4325_s2 = inlined_call_operand.vmem [shape: bf16[128,64], index: 2, kind: input, shape index: {}]   ;;  %s4326_s4 = inlined_call_operand.vmem [shape: f32[1,64], index: 4, kind: input, shape index: {}]   ;;  %s4327_s5 = inlined_call_operand.vmem [shape: f32[1,64], index: 5, kind: input, shape index: {}]   ;;  %s4328_s3 = inlined_call_operand.vmem [shape: f32[32,64], index: 3, kind: input, shape index: {}]   ;;  %s4329_s6 = inlined_call_operand.vmem [shape: bf16[2,2,64,384], index: 6, kind: input, shape index: {}]   ;;  %s4330_s7 = inlined_call_operand.vmem [shape: f32[2,2,1,384], index: 7, kind: input, shape index: {}]   ;;  %s4331_s1 = inlined_call_operand.vmem [shape: s32[2,1,8], index: 1, kind: input, shape index: {}]   ;;  %s4332_s8 = inlined_call_operand.vmem [shape: bf16[2,2,128,64], index: 8, kind: input, shape index: {}]   ;;  %s4333_s9 = inlined_call_operand.vmem [shape: f32[2,1,64], index: 9, kind: input, shape index: {}]   ;;  %s4334_s10 = inlined_call_operand.vmem [shape: f32[2,1,64], index: 10, kind: input, shape index: {}]   ;;  %s4335_s11 = inlined_call_operand.vmem [shape: f32[2,1,64], index: 11, kind: input, shape index: {}]   ;;  %s4336_s12 = inlined_call_operand.vmem [shape: bf16[2,64,256], index: 12, kind: input, shape index: {}]   ;;  %s4337_s15 = inlined_call_operand.vmem [shape: f32[2,1,64], index: 15, kind: input, shape index: {}]   ;;  %s4338_s14 = inlined_call_operand.vmem [shape: bf16[2,256,64], index: 14, kind: input, shape index: {}]   ;;  %s4339_s13 = inlined_call_operand.vmem [shape: f32[2,1,256], index: 13, kind: input, shape index: {}]   ;;  %s4340_s16 = inlined_call_operand.vmem [shape: f32[2,1,64], index: 16, kind: input, shape index: {}]   ;;  %s4341_s17 = inlined_call_operand.vmem [shape: f32[2,1,64], index: 17, kind: input, shape index: {}]   ;;  %s4342_s19 = inlined_call_operand.vmem [shape: f32[1,128], index: 19, kind: input, shape index: {}]   ;;  %s4343_s18 = inlined_call_operand.vmem [shape: bf16[64,128], index: 18, kind: input, shape index: {}]   ;;  %s4344_s20 = inlined_call_operand.vmem [shape: f32[16,128], index: 20, kind: output, shape index: {}]  }
   0x1   :  { %4347 = sst [smem:[#allocation2_spill]] %s4324_s0  ;;  %3246 = vset.pattern.permute.xlu0 %v3330_v0  ;;  %v2443_v27 = vld [vmem:[%s4329_s6 + $0x48] sm:$0xf]  ;;  %v3122_v28 = vld [vmem:[%s4329_s6 + $0x50] sm:$0xf0]  ;;  %vm619_vm10 = vcmask 1043456  }
   0x2   :  { %4348 = sst [smem:[#allocation3_spill]] %s4325_s2  ;;  %v69_v13 = vand.u32 127, %v68_v12  ;;  %v3121_v29 = vld [vmem:[%s4329_s6 + $0x4c] sm:$0xf]  ;;  %v2444_v30 = vor.u32 %v3122_v28, %v2443_v27  ;;  %v2445_v31 = vld [vmem:[%s4329_s6 + $0x54] sm:$0xf0] }
   0x3   :  { %4349 = sst [smem:[#allocation4_spill]] %s4326_s4  ;;  %v2451_v32 = vld [vmem:[%s4329_s6 + $0x50] sm:$0xf]  ;;  %v3123_v33 = vld [vmem:[%s4329_s6 + $0x58] sm:$0xf0]  ;;  %v2448_v34 = vor.u32 %v3121_v29, %v2445_v31  ;;  %vm563_vm11 = vcmask 64512  }
   0x4   :  { %4350 = sst [smem:[#allocation5_spill]] %s4327_s5  ;;  %v2452_v35 = vor.u32 %v3123_v33, %v2451_v32  ;;  %327 = vmatpush.bf16.msra.mxu1 %v2444_v30  ;;  %v2431_v36 = vld [vmem:[%s4329_s6 + $0x30] sm:$0xf]  ;;  %v3119_v37 = vld [vmem:[%s4329_s6 + $0x38] sm:$0xf0] }
   0x5   :  { %4351 = sst [smem:[#allocation6_spill]] %s4328_s3  ;;  %341 = vmatpush.bf16.msra.mxu2 %v2448_v34  ;;  %v3118_v38 = vld [vmem:[%s4329_s6 + $0x34] sm:$0xf]  ;;  %v2432_v39 = vor.u32 %v3119_v37, %v2431_v36  ;;  %v2433_v40 = vld [vmem:[%s4329_s6 + $0x3c] sm:$0xf0] }
   0x6   :  { %s4352_s23 = sld [smem:[#allocation2_spill]]  ;;  %355 = vmatpush.bf16.msra.mxu3 %v2452_v35  ;;  %v2439_v41 = vld [vmem:[%s4329_s6 + $0x38] sm:$0xf]  ;;  %v3120_v42 = vld [vmem:[%s4329_s6 + $0x40] sm:$0xf0]  ;;  %v2436_v43 = vor.u32 %v3118_v38, %v2433_v40 }
   0x7   :  { %s4353_s25 = sld [smem:[#allocation3_spill]]  ;;  %v2440_v44 = vor.u32 %v3120_v42, %v2439_v41  ;;  %v2419_v47 = vld [vmem:[%s4329_s6 + $0x18] sm:$0xf]  ;;  %v3116_v48 = vld [vmem:[%s4329_s6 + $0x20] sm:$0xf0] }
   0x8   :  { %s4354_s3 = sld [smem:[#allocation6_spill]]  ;;  %328 = vmatpush.bf16.msra.mxu1 %v2432_v39  ;;  %v2420_v50 = vor.u32 %v3116_v48, %v2419_v47  ;;  %v3115_v51 = vld [vmem:[%s4329_s6 + $0x1c] sm:$0xf]  ;;  %v2421_v52 = vld [vmem:[%s4329_s6 + $0x24] sm:$0xf0] }
   0x9   :  { %342 = vmatpush.bf16.msra.mxu2 %v2436_v43  ;;  %v2427_v53 = vld [vmem:[%s4329_s6 + $0x20] sm:$0xf]  ;;  %v2424_v56 = vor.u32 %v3115_v51, %v2421_v52  ;;  %v3117_v57 = vld [vmem:[%s4329_s6 + $0x28] sm:$0xf0]  ;;  %v3112_v62 = vld [vmem:[%s4329_s6 + $0x4] sm:$0xf] }
   0xa   :  { %356 = vmatpush.bf16.msra.mxu3 %v2440_v44  ;;  %v2428_v58 = vor.u32 %v3117_v57, %v2427_v53  ;;  %v2407_v60 = vld [vmem:[%s4329_s6] sm:$0xf]  ;;  %v3113_v61 = vld [vmem:[%s4329_s6 + $0x8] sm:$0xf0]  ;;  %v2409_v0 = vld [vmem:[%s4329_s6 + $0xc] sm:$0xf0] }
   0xb   :  { %v2408_v63 = vor.u32 %v3113_v61, %v2407_v60  ;;  %v2501_v27 = vld [vmem:[%s4329_s6 + $0x9c] sm:$0xf0]  ;;  %v2507_v28 = vld [vmem:[%s4329_s6 + $0x98] sm:$0xf]  ;;  %v3132_v30 = vld [vmem:[%s4329_s6 + $0xa0] sm:$0xf0] }
   0xc   :  { %v66_v1 = vld [vmem:[%s4352_s23] sm:$0xff]  ;;  %v67_v4 = vld [vmem:[%s4352_s23 + $0x8] sm:$0xff]  ;;  %329 = vmatpush.bf16.msra.mxu1 %v2420_v50  ;;  %v2487_v31 = vld [vmem:[%s4329_s6 + $0x78] sm:$0xf]  ;;  %v2508_v35 = vor.u32 %v3132_v30, %v2507_v28  ;;  %s4355_s23 = sld [smem:[#allocation4_spill]] }
   0xd   :  { %v3111_v2 = vld [vmem:[%s4353_s25 + $0x38] sm:$0xff]  ;;  %71 = vperm.xlu0 %3246, %v66_v1   ;;  %v3110_v3 = vld [vmem:[%s4353_s25 + $0x30] sm:$0xff]  ;;  %v3109_v5 = vld [vmem:[%s4353_s25 + $0x28] sm:$0xff]  ;;  %343 = vmatpush.bf16.msra.mxu2 %v2424_v56  ;;  %s4356_s26 = sld [smem:[#allocation5_spill]] }
   0xe   :  { %145 = vmatpush.bf16.msra.mxu0 %v3111_v2  ;;  %v3108_v6 = vld [vmem:[%s4353_s25 + $0x20] sm:$0xff]  ;;  %v3107_v7 = vld [vmem:[%s4353_s25 + $0x18] sm:$0xff]  ;;  %v3106_v8 = vld [vmem:[%s4353_s25 + $0x10] sm:$0xff]  ;;  %357 = vmatpush.bf16.msra.mxu3 %v2428_v58 }
   0xf   :  { %v3105_v9 = vld [vmem:[%s4353_s25 + $0x8] sm:$0xff]  ;;  %v3104_v10 = vld [vmem:[%s4353_s25] sm:$0xff]  ;;  %v3114_v2 = vld [vmem:[%s4329_s6 + $0x10] sm:$0xf0] }
  0x10   :  { %v159_v16 = vld [vmem:[%s4354_s3] sm:$0xff]  ;;  %v2415_v1 = vld [vmem:[%s4329_s6 + $0x8] sm:$0xf]  ;;  %330 = vmatpush.bf16.msra.mxu1 %v2408_v63  ;;  %v3127_v36 = vld [vmem:[%s4329_s6 + $0x7c] sm:$0xf] }
  0x11   :  { %v3128_v32 = vld [vmem:[%s4329_s6 + $0x80] sm:$0xf0]  ;;  %v2489_v37 = vld [vmem:[%s4329_s6 + $0x84] sm:$0xf0]  ;;  %v2495_v39 = vld [vmem:[%s4329_s6 + $0x80] sm:$0xf] }
  0x12   :  { %146 = vmatpush.bf16.msra.mxu0 %v3110_v3  ;;  %v3129_v40 = vld [vmem:[%s4329_s6 + $0x88] sm:$0xf0]  ;;  %v2488_v41 = vor.u32 %v3128_v32, %v2487_v31  ;;  %v2492_v43 = vor.u32 %v3127_v36, %v2489_v37  ;;  %v2475_v44 = vld [vmem:[%s4329_s6 + $0x60] sm:$0xf]  ;;  %v3124_v48 = vld [vmem:[%s4329_s6 + $0x64] sm:$0xf] }
  0x13   :  { %v2496_v47 = vor.u32 %v3129_v40, %v2495_v39  ;;  %v2483_v51 = vld [vmem:[%s4329_s6 + $0x68] sm:$0xf]  ;;  %v3126_v52 = vld [vmem:[%s4329_s6 + $0x70] sm:$0xf0] }
  0x14   :  { %v2484_v57 = vor.u32 %v3126_v52, %v2483_v51 }
  0x15   :  { %74 = vperm.xlu0 %3246, %v67_v4   ;;  %v2412_v4 = vor.u32 %v3112_v62, %v2409_v0 }
  0x16   :  { %147 = vmatpush.bf16.msra.mxu0 %v3109_v5  ;;  %v2416_v5 = vor.u32 %v3114_v2, %v2415_v1  ;;  %v3247_v1 = vld [vmem:[%s4355_s23] ss:$0 sm:$0xff] }
  0x17   :  { %344 = vmatpush.bf16.msra.mxu2 %v2412_v4 }
  0x18   :  { %358 = vmatpush.bf16.msra.mxu3 %v2416_v5 }
  0x1a   :  { %148 = vmatpush.bf16.msra.mxu0 %v3108_v6 }
  0x1e   :  { %149 = vmatpush.bf16.msra.mxu0 %v3107_v7 }
  0x22   :  { %150 = vmatpush.bf16.msra.mxu0 %v3106_v8 }
  0x26   :  { %151 = vmatpush.bf16.msra.mxu0 %v3105_v9  ;;  %v2511_v9 = vld [vmem:[%s4329_s6 + $0xa8] sm:$0xf] }
  0x2a   :  { %152 = vmatpush.bf16.msra.mxu0 %v3104_v10  ;;  %v3134_v10 = vld [vmem:[%s4329_s6 + $0xb0] sm:$0xf0] }
  0x7f   :  { %v72_v11 = vpop.permute.xlu0 %71 }
  0x80   :  { %vm76_vm0 = vcmp.eq.s32.totalorder %v69_v13, %v72_v11  ;;  %v3133_v11 = vld [vmem:[%s4329_s6 + $0xac] sm:$0xf] }
  0x87   :  { %v75_v14 = vpop.permute.xlu0 %74 }
  0x88   :  { %vm77_vm1 = vcmp.eq.s32.totalorder %v69_v13, %v75_v14  ;;  %v2512_v14 = vor.u32 %v3134_v10, %v2511_v9 }
  0x89   :  { %vm2401_vm2 = vmpackc.low %vm77_vm1, %vm76_vm0 }
  0x8a   :  { %2402 = vmatmul.msk.bf16.vlgmr.msra.gmra.mxu0 %vm2401_vm2, %v3331_v15  ;;  %v2513_v15 = vld [vmem:[%s4329_s6 + $0xb4] sm:$0xf0]  ;;  %459 = vmatpush.bf16.msrb.mxu1 %v2512_v14 }
 0x107   :  { %v154_v17 = vpop.f32.mrf.mxu0 }
 0x108   :  { %v3470_v18 = vadd.f32 %v159_v16, %v154_v17  ;;  %v2516_v17 = vor.u32 %v3133_v11, %v2513_v15 }
 0x10a   :  { %v165_v19 = vsel %vm164_vm3, %v3470_v18, 0.0  ;;  %v173_v20 = vmul.f32 %v3470_v18, %v3470_v18  ;;  %473 = vmatpush.bf16.msrb.mxu2 %v2516_v17 }
 0x10b   :  { %166 = vadd.xlane.f32.xlu1 %v165_v19  ;;  %v3135_v19 = vld [vmem:[%s4329_s6 + $0xb8] sm:$0xf0] }
 0x10c   :  { %v175_v21 = vsel %vm164_vm3, %v173_v20, 0.0  ;;  %v2499_v20 = vld [vmem:[%s4329_s6 + $0x90] sm:$0xf] }
 0x10d   :  { %176 = vadd.xlane.f32.xlu2 %v175_v21  ;;  %v3131_v21 = vld [vmem:[%s4329_s6 + $0x98] sm:$0xf0] }
 0x10f   :  { %v156_v22 = vpop.f32.mrf.mxu0 }
 0x110   :  { %v3477_v23 = vadd.f32 %v159_v16, %v156_v22  ;;  %v2519_v16 = vld [vmem:[%s4329_s6 + $0xb0] sm:$0xf] }
 0x112   :  { %v168_v24 = vsel %vm164_vm3, %v3477_v23, 0.0  ;;  %v174_v25 = vmul.f32 %v3477_v23, %v3477_v23 }
 0x113   :  { %169 = vadd.xlane.f32.xlu1 %v168_v24  ;;  %v2520_v24 = vor.u32 %v3135_v19, %v2519_v16 }
 0x114   :  { %v178_v26 = vsel %vm164_vm3, %v174_v25, 0.0  ;;  %v2500_v25 = vor.u32 %v3131_v21, %v2499_v20 }
 0x115   :  { %179 = vadd.xlane.f32.xlu2 %v178_v26  ;;  %v3130_v26 = vld [vmem:[%s4329_s6 + $0x94] sm:$0xf]  ;;  %487 = vmatpush.bf16.msrb.mxu3 %v2520_v24 }
 0x116   :  { %v2504_v29 = vor.u32 %v3130_v26, %v2501_v27  ;;  %460 = vmatpush.bf16.msrb.mxu1 %v2500_v25 }
 0x118   :  { %474 = vmatpush.bf16.msrb.mxu2 %v2504_v29 }
 0x119   :  { %488 = vmatpush.bf16.msrb.mxu3 %v2508_v35 }
 0x11a   :  { %461 = vmatpush.bf16.msrb.mxu1 %v2488_v41 }
 0x11c   :  { %475 = vmatpush.bf16.msrb.mxu2 %v2492_v43 }
 0x11d   :  { %489 = vmatpush.bf16.msrb.mxu3 %v2496_v47 }
 0x121   :  { %490 = vmatpush.bf16.msrb.mxu3 %v2484_v57 }
 0x17e   :  { %v167_v45 = vpop.xlane.xlu1 %166 }
 0x17f   :  { %v3520_v46 = vmul.f32 0.015625, %v167_v45  ;;  %v3125_v45 = vld [vmem:[%s4329_s6 + $0x68] sm:$0xf0] }
 0x180   :  { %v177_v49 = vpop.xlane.xlu2 %176  ;;  %v2476_v53 = vor.u32 %v3125_v45, %v2475_v44 }
 0x181   :  { %v183_v54 = vmul.f32 %v3520_v46, %v3520_v46  ;;  %v181_v55 = vmul.f32 0.015625, %v177_v49  ;;  %v2477_v49 = vld [vmem:[%s4329_s6 + $0x6c] sm:$0xf0]  ;;  %v187_v63 = vsub.f32 %v3470_v18, %v3520_v46 }
 0x182   :  { %462 = vmatpush.bf16.msrb.mxu1 %v2476_v53 }
 0x183   :  { %v185_v59 = vsub.f32 %v181_v55, %v183_v54  ;;  %v2480_v55 = vor.u32 %v3124_v48, %v2477_v49 }
 0x185   :  { %v3560_v3 = vadd.f32 1e-12, %v185_v59  ;;  %476 = vmatpush.bf16.msrb.mxu2 %v2480_v55 }
 0x186   :  { %v170_v6 = vpop.xlane.xlu1 %169 }
 0x187   :  { %3262 = vrsqrt.f32 %v3560_v3  ;;  %v3563_v7 = vmul.f32 0.015625, %v170_v6  ;;  %vm197_vm5 = vweird.f32 %v3560_v3  ;;  %v3248_v6 = vld [vmem:[%s4356_s26] ss:$0 sm:$0xff] }
 0x188   :  { %v180_v8 = vpop.xlane.xlu2 %179 }
 0x189   :  { %v184_v12 = vmul.f32 %v3563_v7, %v3563_v7  ;;  %v182_v13 = vmul.f32 0.015625, %v180_v8 }
 0x18b   :  { %v186_v22 = vsub.f32 %v182_v13, %v184_v12 }
 0x18d   :  { %v3263_v33 = vpop.eup %3262  ;;  %v190_v34 = vadd.f32 1e-12, %v186_v22 }
 0x18e   :  { %v192_v38 = vmul.f32 %v3263_v33, %v3560_v3  ;;  %vm198_vm4 = vweird.f32 %v3263_v33  ;;  %v188_v3 = vsub.f32 %v3477_v23, %v3563_v7  ;;  %v248_v23 = vld [vmem:[%s4330_s7] sm:$0x7] }
 0x18f   :  { %3264 = vrsqrt.f32 %v190_v34  ;;  %vm199_vm6 = vmor %vm197_vm5, %vm198_vm4  ;;  %vm207_vm8 = vweird.f32 %v190_v34  ;;  %v251_v12 = vperm.slane %v248_v23, 1  ;;  %v252_v13 = vperm.slane %v248_v23, 2 }
 0x190   :  { %v193_v42 = vmul.f32 %v3263_v33, %v192_v38  ;;  %v250_v17 = vperm.slane %v248_v23, 0 }
 0x192   :  { %v194_v50 = vmul.f32 0.5, %v193_v42 }
 0x194   :  { %v195_v54 = vsub.f32 1.5, %v194_v50 }
 0x195   :  { %v3265_v56 = vpop.eup %3264 }
 0x196   :  { %v196_v58 = vmul.f32 %v3263_v33, %v195_v54  ;;  %v202_v59 = vmul.f32 %v3265_v56, %v190_v34  ;;  %vm208_vm7 = vweird.f32 %v3265_v56 }
 0x197   :  { %vm209_vm9 = vmor %vm207_vm8, %vm208_vm7 }
 0x198   :  { %v203_v60 = vmul.f32 %v3265_v56, %v202_v59  ;;  %v200_v61 = vsel %vm199_vm6, %v3263_v33, %v196_v58  ;;  %v2472_v33 = vld [vmem:[%s4330_s7 + $0x3] sm:$0x7] }
 0x199   :  { %v211_v2 = vmul.f32 %v200_v61, %v187_v63  ;;  %v386_v34 = vperm.slane %v2472_v33, 1  ;;  %v387_v37 = vperm.slane %v2472_v33, 2  ;;  %v385_v43 = vperm.slane %v2472_v33, 0  ;;  %v223_v61 = vld [vmem:[%s4331_s1] sm:$0x1] }
 0x19a   :  { %v204_v62 = vmul.f32 0.5, %v203_v60 }
 0x19b   :  { %v216_v8 = vmul.f32 %v3247_v1, %v211_v2 }
 0x19c   :  { %v205_v0 = vsub.f32 1.5, %v204_v62  ;;  %v225_v62 = vcvt.s32.f32 %v223_v61 }
 0x19d   :  { %v3651_v9 = vadd.f32 %v3248_v6, %v216_v8  ;;  %v224_v8 = vld [vmem:[%s4331_s1 + $0x1] sm:$0x1] }
 0x19e   :  { %v206_v4 = vmul.f32 %v3265_v56, %v205_v0  ;;  %v2403_v63 = vadd.f32 -1.0, %v225_v62 }
 0x1a0   :  { %v210_v5 = vsel %vm209_vm9, %v3265_v56, %v206_v4  ;;  %v229_v0 = vmul.f32 1e+09, %v2403_v63 }
 0x1a1   :  { %v212_v18 = vmul.f32 %v210_v5, %v188_v3 }
 0x1a3   :  { %v217_v46 = vmul.f32 %v3247_v1, %v212_v18  ;;  %v3676_v1 = vperm.slane %v229_v0, 0 }
 0x1a5   :  { %v3653_v10 = vadd.f32 %v3248_v6, %v217_v46  ;;  %v226_v46 = vcvt.s32.f32 %v224_v8 }
 0x1a7   :  { %v231_v11 = vpack.c.bf16 %v3653_v10, %v3651_v9 }
 0x1a9   :  { %2453 = vmatmul.msk.bf16.vlgmr.msra.gmra.mxu1 %vm164_vm3, %v231_v11  ;;  %2454 = vmatmul.msk.bf16.vlgmr.msra.gmra.mxu2 %vm164_vm3, %v231_v11 }
 0x1aa   :  { %2455 = vmatmul.msk.bf16.vlgmr.msra.gmra.mxu3 %vm164_vm3, %v231_v11 }
 0x1b9   :  { %2521 = vmatmul.msk.bf16.vlgmr.msrb.gmra.mxu1 %vm164_vm3, %v231_v11  ;;  %2522 = vmatmul.msk.bf16.vlgmr.msrb.gmra.mxu2 %vm164_vm3, %v231_v11 }
 0x1ba   :  { %2523 = vmatmul.msk.bf16.vlgmr.msrb.gmra.mxu3 %vm164_vm3, %v231_v11  ;;  %v2404_v11 = vadd.f32 -1.0, %v226_v46  ;;  %v3138_v46 = vld [vmem:[%s4332_s8 + $0x10] sm:$0xff] }
 0x226   :  { %v332_v7 = vpop.f32.mrf.mxu1 }
 0x227   :  { %v333_v22 = vadd.f32 %v332_v7, %v250_v17 }
 0x229   :  { %v497_v29 = vpack.c.bf16 %v333_v22, %v333_v22 }
 0x22c   :  { %v346_v14 = vpop.f32.mrf.mxu2 }
 0x22d   :  { %v347_v15 = vadd.f32 %v346_v14, %v251_v12  ;;  %v360_v16 = vpop.f32.mrf.mxu3 }
 0x22e   :  { %v361_v19 = vadd.f32 %v360_v16, %v252_v13  ;;  %v334_v25 = vpop.f32.mrf.mxu1 }
 0x22f   :  { %v501_v20 = vpack.c.bf16 %v347_v15, %v347_v15  ;;  %v335_v35 = vadd.f32 %v334_v25, %v250_v17 }
 0x230   :  { %v612_v21 = vpack.c.bf16 %v361_v19, %v361_v19 }
 0x231   :  { %518 = vmatpush.bf16.xpose.msrb.mxu0 %v501_v20  ;;  %v498_v42 = vpack.c.bf16 %v335_v35, %v335_v35 }
 0x232   :  { %v621_v24 = vsel %vm619_vm10, %v612_v21, 0 }
 0x234   :  { %v348_v26 = vpop.f32.mrf.mxu2 }
 0x235   :  { %v349_v27 = vadd.f32 %v348_v26, %v251_v12  ;;  %v362_v28 = vpop.f32.mrf.mxu3  ;;  %v230_v12 = vmul.f32 1e+09, %v2404_v11  ;;  %v3145_v11 = vld [vmem:[%s4332_s8 + $0x48] sm:$0xff] }
 0x236   :  { %v363_v30 = vadd.f32 %v362_v28, %v252_v13  ;;  %v464_v39 = vpop.f32.mrf.mxu1 }
 0x237   :  { %v502_v31 = vpack.c.bf16 %v349_v27, %v349_v27  ;;  %v465_v48 = vadd.f32 %v464_v39, %v385_v43  ;;  %v3685_v14 = vperm.slane %v230_v12, 0  ;;  %v3136_v12 = vld [vmem:[%s4332_s8] sm:$0xff] }
 0x238   :  { %v613_v32 = vpack.c.bf16 %v363_v30, %v363_v30  ;;  %519 = vmatmul.bf16.vlgmr.msrb.gmra.mxu0 %v497_v29 }
 0x239   :  { %630 = vmatpush.bf16.msra.mxu0 %v621_v24  ;;  %531 = vmatpush.bf16.xpose.msra.mxu1 %v502_v31  ;;  %v499_v53 = vpack.c.bf16 %v465_v48, %v465_v48  ;;  %v3142_v48 = vld [vmem:[%s4332_s8 + $0x30] sm:$0xff] }
 0x23a   :  { %v640_v36 = vsel %vm619_vm10, %v613_v32, 0 }
 0x23c   :  { %v478_v38 = vpop.f32.mrf.mxu2 }
 0x23d   :  { %v479_v40 = vadd.f32 %v478_v38, %v386_v34  ;;  %v492_v41 = vpop.f32.mrf.mxu3 }
 0x23e   :  { %v493_v44 = vadd.f32 %v492_v41, %v387_v37  ;;  %v466_v55 = vpop.f32.mrf.mxu1 }
 0x23f   :  { %v503_v45 = vpack.c.bf16 %v479_v40, %v479_v40  ;;  %v467_v58 = vadd.f32 %v466_v55, %v385_v43 }
 0x240   :  { %v614_v47 = vpack.c.bf16 %v493_v44, %v493_v44  ;;  %532 = vmatmul.bf16.vlgmr.msra.gmra.mxu1 %v498_v42  ;;  %v3151_v44 = vld [vmem:[%s4332_s8 + $0x78] sm:$0xff] }
 0x241   :  { %649 = vmatpush.bf16.msrb.mxu1 %v640_v36  ;;  %544 = vmatpush.bf16.xpose.msra.mxu2 %v503_v45  ;;  %v500_v60 = vpack.c.bf16 %v467_v58, %v467_v58  ;;  %v3143_v45 = vld [vmem:[%s4332_s8 + $0x38] sm:$0xff] }
 0x242   :  { %v659_v49 = vsel %vm619_vm10, %v614_v47, 0  ;;  %759 = vmatpush.bf16.msrb.mxu0 %v3143_v45  ;;  %v3150_v47 = vld [vmem:[%s4332_s8 + $0x70] sm:$0xff] }
 0x244   :  { %v480_v50 = vpop.f32.mrf.mxu2 }
 0x245   :  { %v481_v51 = vadd.f32 %v480_v50, %v386_v34  ;;  %v494_v52 = vpop.f32.mrf.mxu3  ;;  %844 = vmatpush.bf16.msra.mxu1 %v3151_v44  ;;  %v3149_v50 = vld [vmem:[%s4332_s8 + $0x68] sm:$0xff]  ;;  %v3158_v44 = vld [vmem:[%s4336_s12 + $0x34] sm:$0xf] }
 0x246   :  { %v495_v54 = vadd.f32 %v494_v52, %v387_v37  ;;  %760 = vmatpush.bf16.msrb.mxu0 %v3142_v48  ;;  %v3148_v52 = vld [vmem:[%s4332_s8 + $0x60] sm:$0xff] }
 0x247   :  { %v504_v56 = vpack.c.bf16 %v481_v51, %v481_v51  ;;  %v3141_v51 = vld [vmem:[%s4332_s8 + $0x28] sm:$0xff] }
 0x248   :  { %v615_v57 = vpack.c.bf16 %v495_v54, %v495_v54  ;;  %545 = vmatmul.bf16.vlgmr.msra.gmra.mxu2 %v499_v53  ;;  %v3140_v53 = vld [vmem:[%s4332_s8 + $0x20] sm:$0xff] }
 0x249   :  { %668 = vmatpush.bf16.msrb.mxu2 %v659_v49  ;;  %557 = vmatpush.bf16.xpose.msra.mxu3 %v504_v56 }
 0x24a   :  { %v678_v59 = vsel %vm619_vm10, %v615_v57, 0  ;;  %845 = vmatpush.bf16.msra.mxu1 %v3150_v47  ;;  %761 = vmatpush.bf16.msrb.mxu0 %v3141_v51  ;;  %v2636_v47 = vld [vmem:[%s4336_s12 + $0x38] sm:$0xf0]  ;;  %v3156_v51 = vld [vmem:[%s4336_s12 + $0x24] sm:$0xf] }
 0x24b   :  { %v2639_v48 = vor.u32 %v3158_v44, %v2636_v47  ;;  %v3166_v44 = vld [vmem:[%s4338_s14 + $0x30] sm:$0xff]  ;;  %v3165_v47 = vld [vmem:[%s4338_s14 + $0x28] sm:$0xff] }
 0x24e   :  { %846 = vmatpush.bf16.msra.mxu1 %v3149_v50  ;;  %762 = vmatpush.bf16.msrb.mxu0 %v3140_v53  ;;  %v3157_v50 = vld [vmem:[%s4336_s12 + $0x24] sm:$0xf0] }
 0x250   :  { %558 = vmatmul.bf16.vlgmr.msra.gmra.mxu3 %v500_v60  ;;  %v3139_v60 = vld [vmem:[%s4332_s8 + $0x18] sm:$0xff] }
 0x251   :  { %687 = vmatpush.bf16.msrb.mxu3 %v678_v59  ;;  %v3147_v59 = vld [vmem:[%s4332_s8 + $0x58] sm:$0xff] }
 0x252   :  { %847 = vmatpush.bf16.msra.mxu1 %v3148_v52  ;;  %763 = vmatpush.bf16.msrb.mxu0 %v3139_v60  ;;  %v3154_v60 = vld [vmem:[%s4336_s12 + $0x14] sm:$0xf] }
 0x255   :  { %998 = vmatpush.bf16.msra.mxu3 %v2639_v48  ;;  %v3173_v48 = vld [vmem:[%s4338_s14 + $0x68] sm:$0xff] }
 0x256   :  { %848 = vmatpush.bf16.msra.mxu1 %v3147_v59  ;;  %764 = vmatpush.bf16.msrb.mxu0 %v3138_v46  ;;  %v3155_v59 = vld [vmem:[%s4336_s12 + $0x14] sm:$0xf0] }
 0x2b5   :  { %v520_v2 = vpop.f32.mrf.mxu0 }
 0x2b6   :  { %v521_v4 = vadd.f32 %v520_v2, %v3676_v1 }
 0x2b8   :  { %v564_v3 = vsel %vm563_vm11, %v521_v4, -inf }
 0x2b9   :  { %565 = vmax.xlane.f32.xlu2 %v564_v3 }
 0x2bd   :  { %v522_v5 = vpop.f32.mrf.mxu0  ;;  %v533_v6 = vpop.f32.mrf.mxu1 }
 0x2be   :  { %v534_v20 = vadd.f32 %v533_v6, %v3685_v14 }
 0x2c0   :  { %v567_v22 = vsel %vm563_vm11, %v534_v20, -inf }
 0x2c5   :  { %v535_v18 = vpop.f32.mrf.mxu1 }
 0x2c6   :  { %v3146_v18 = vld [vmem:[%s4332_s8 + $0x50] sm:$0xff] }
 0x2c7   :  { %849 = vmatpush.bf16.msra.mxu1 %v3146_v18  ;;  %v2612_v18 = vld [vmem:[%s4336_s12 + $0x8] sm:$0xf0] }
 0x2cb   :  { %v546_v23 = vpop.f32.mrf.mxu2  ;;  %850 = vmatpush.bf16.msra.mxu1 %v3145_v11 }
 0x2cc   :  { %v547_v7 = vadd.f32 %v546_v23, %v3676_v1  ;;  %v3137_v23 = vld [vmem:[%s4332_s8 + $0x8] sm:$0xff] }
 0x2cd   :  { %765 = vmatpush.bf16.msrb.mxu0 %v3137_v23 }
 0x2ce   :  { %v570_v13 = vsel %vm563_vm11, %v547_v7, -inf }
 0x2cf   :  { %571 = vmax.xlane.f32.xlu0 %v570_v13 }
 0x2d1   :  { %766 = vmatpush.bf16.msrb.mxu0 %v3136_v12 }
 0x2d3   :  { %v548_v15 = vpop.f32.mrf.mxu2  ;;  %v559_v16 = vpop.f32.mrf.mxu3 }
 0x2d4   :  { %v560_v17 = vadd.f32 %v559_v16, %v3685_v14 }
 0x2d6   :  { %v573_v19 = vsel %vm563_vm11, %v560_v17, -inf }
 0x2d7   :  { %574 = vmax.xlane.f32.xlu1 %v573_v19 }
 0x2db   :  { %v561_v21 = vpop.f32.mrf.mxu3 }
 0x2df   :  { %568 = vmax.xlane.f32.xlu1 %v567_v22 }
 0x32c   :  { %v566_v24 = vpop.xlane.xlu2 %565 }
 0x32d   :  { %v576_v27 = vsub.f32 %v521_v4, %v566_v24 }
 0x32f   :  { %v580_v29 = vmul.f32 1.442695, %v576_v27 }
 0x342   :  { %v572_v25 = vpop.xlane.xlu0 %571 }
 0x343   :  { %v578_v26 = vsub.f32 %v547_v7, %v572_v25  ;;  %v3144_v7 = vld [vmem:[%s4332_s8 + $0x40] sm:$0xff] }
 0x344   :  { %851 = vmatpush.bf16.msra.mxu1 %v3144_v7 }
 0x345   :  { %v584_v28 = vmul.f32 1.442695, %v578_v26  ;;  %v3249_v26 = vld [vmem:[%s4333_s9] ss:$0 sm:$0xff] }
 0x347   :  { %3266 = vpow2.f32 %v584_v28 }
 0x348   :  { %3268 = vpow2.f32 %v580_v29 }
 0x34a   :  { %v575_v30 = vpop.xlane.xlu1 %574 }
 0x34b   :  { %v579_v31 = vsub.f32 %v560_v17, %v575_v30 }
 0x34d   :  { %v3267_v32 = vpop.eup %3266  ;;  %v586_v33 = vmul.f32 1.442695, %v579_v31 }
 0x34e   :  { %v594_v34 = vsel %vm563_vm11, %v3267_v32, 0.0  ;;  %v3269_v36 = vpop.eup %3268 }
 0x34f   :  { %3270 = vpow2.f32 %v586_v33  ;;  %595 = vadd.xlane.f32.xlu2 %v594_v34  ;;  %v588_v41 = vsel %vm563_vm11, %v3269_v36, 0.0 }
 0x352   :  { %v569_v35 = vpop.xlane.xlu1 %568 }
 0x353   :  { %v577_v37 = vsub.f32 %v534_v20, %v569_v35 }
 0x355   :  { %v3271_v38 = vpop.eup %3270  ;;  %v582_v39 = vmul.f32 1.442695, %v577_v37 }
 0x356   :  { %v597_v40 = vsel %vm563_vm11, %v3271_v38, 0.0 }
 0x357   :  { %3272 = vpow2.f32 %v582_v39  ;;  %598 = vadd.xlane.f32.xlu1 %v597_v40  ;;  %589 = vadd.xlane.f32.xlu2 %v588_v41 }
 0x35d   :  { %v3273_v42 = vpop.eup %3272 }
 0x35e   :  { %v591_v43 = vsel %vm563_vm11, %v3273_v42, 0.0 }
 0x35f   :  { %592 = vadd.xlane.f32.xlu1 %v591_v43  ;;  %v2634_v43 = vld [vmem:[%s4336_s12 + $0x30] sm:$0xf] }
 0x3c2   :  { %v596_v49 = vpop.xlane.xlu2 %595 }
 0x3c3   :  { %3274 = vrcp.f32 %v596_v49  ;;  %v2626_v49 = vld [vmem:[%s4336_s12 + $0x20] sm:$0xf] }
 0x3c4   :  { %v2627_v53 = vor.u32 %v3157_v50, %v2626_v49  ;;  %v3164_v49 = vld [vmem:[%s4338_s14 + $0x20] sm:$0xff] }
 0x3c5   :  { %v3172_v50 = vld [vmem:[%s4338_s14 + $0x60] sm:$0xff] }
 0x3c9   :  { %v3275_v54 = vpop.eup %3274 }
 0x3ca   :  { %v606_v55 = vmul.f32 %v3275_v54, %v3267_v32  ;;  %v599_v56 = vpop.xlane.xlu1 %598  ;;  %v590_v57 = vpop.xlane.xlu2 %589  ;;  %v2628_v54 = vld [vmem:[%s4336_s12 + $0x28] sm:$0xf0] }
 0x3cb   :  { %3276 = vrcp.f32 %v599_v56 }
 0x3cc   :  { %v610_v58 = vpack.c.bf16 %v606_v55, %v606_v55  ;;  %3278 = vrcp.f32 %v590_v57  ;;  %v2631_v55 = vor.u32 %v3156_v51, %v2628_v54  ;;  %v3163_v51 = vld [vmem:[%s4338_s14 + $0x18] sm:$0xff]  ;;  %v3170_v54 = vld [vmem:[%s4338_s14 + $0x50] sm:$0xff] }
 0x3ce   :  { %2526 = vmatmul.msk.bf16.vlgmr.msrb.gmra.mxu2 %vm563_vm11, %v610_v58  ;;  %999 = vmatpush.bf16.msra.mxu3 %v2631_v55  ;;  %v2618_v58 = vld [vmem:[%s4336_s12 + $0x10] sm:$0xf]  ;;  %v3161_v55 = vld [vmem:[%s4338_s14 + $0x8] sm:$0xff] }
 0x3d1   :  { %v3277_v61 = vpop.eup %3276 }
 0x3d2   :  { %v3279_v62 = vpop.eup %3278  ;;  %v607_v63 = vmul.f32 %v3277_v61, %v3271_v38  ;;  %v593_v0 = vpop.xlane.xlu1 %592 }
 0x3d3   :  { %v604_v2 = vmul.f32 %v3279_v62, %v3269_v36  ;;  %3280 = vrcp.f32 %v593_v0  ;;  %v2620_v0 = vld [vmem:[%s4336_s12 + $0x18] sm:$0xf0] }
 0x3d4   :  { %v611_v4 = vpack.c.bf16 %v607_v63, %v607_v63  ;;  %v2619_v63 = vor.u32 %v3155_v59, %v2618_v58  ;;  %v3160_v58 = vld [vmem:[%s4338_s14] sm:$0xff] }
 0x3d5   :  { %v608_v3 = vpack.c.bf16 %v604_v2, %v604_v2  ;;  %v2623_v2 = vor.u32 %v3154_v60, %v2620_v0  ;;  %v3168_v59 = vld [vmem:[%s4338_s14 + $0x40] sm:$0xff] }
 0x3d6   :  { %2527 = vmatmul.msk.bf16.vlgmr.msrb.gmra.mxu3 %vm563_vm11, %v611_v4 }
 0x3d7   :  { %2524 = vmatmul.msk.bf16.vlgmr.msra.gmra.mxu0 %vm563_vm11, %v608_v3  ;;  %v2610_v3 = vld [vmem:[%s4336_s12] sm:$0xf]  ;;  %1000 = vmatpush.bf16.msra.mxu3 %v2623_v2 }
 0x3d9   :  { %v3281_v5 = vpop.eup %3280 }
 0x3da   :  { %v605_v6 = vmul.f32 %v3281_v5, %v3273_v42  ;;  %v3153_v5 = vld [vmem:[%s4336_s12 + $0x4] sm:$0xf0] }
 0x3dc   :  { %v609_v8 = vpack.c.bf16 %v605_v6, %v605_v6  ;;  %v3152_v6 = vld [vmem:[%s4336_s12 + $0x4] sm:$0xf] }
 0x3dd   :  { %v2615_v23 = vor.u32 %v3152_v6, %v2612_v18 }
 0x3de   :  { %2525 = vmatmul.msk.bf16.vlgmr.msrb.gmra.mxu1 %vm563_vm11, %v609_v8  ;;  %v2611_v8 = vor.u32 %v3153_v5, %v2610_v3 }
 0x3df   :  { %1001 = vmatpush.bf16.msra.mxu3 %v2615_v23 }
 0x451   :  { %v670_v13 = vpop.f32.mrf.mxu2 }
 0x454   :  { %v632_v15 = vpop.f32.mrf.mxu0 }
 0x459   :  { %v672_v16 = vpop.f32.mrf.mxu2  ;;  %v689_v17 = vpop.f32.mrf.mxu3 }
 0x45a   :  { %v795_v19 = vpack.c.bf16 %v689_v17, %v670_v13 }
 0x45b   :  { %v651_v20 = vpop.f32.mrf.mxu1 }
 0x45c   :  { %v634_v21 = vpop.f32.mrf.mxu0  ;;  %v710_v22 = vpack.c.bf16 %v651_v20, %v632_v15  ;;  %852 = vmatmul.bf16.vlgmr.msra.gmra.mxu1 %v795_v19 }
 0x45e   :  { %767 = vmatmul.bf16.vlgmr.msrb.gmra.mxu0 %v710_v22 }
 0x461   :  { %v691_v24 = vpop.f32.mrf.mxu3 }
 0x463   :  { %v653_v25 = vpop.f32.mrf.mxu1 }
 0x4d9   :  { %v853_v27 = vpop.f32.mrf.mxu1 }
 0x4db   :  { %v768_v28 = vpop.f32.mrf.mxu0 }
 0x4dc   :  { %v776_v29 = vadd.f32 %v3249_v26, %v768_v28 }
 0x4de   :  { %v858_v30 = vadd.f32 %v853_v27, %v776_v29 }
 0x4e0   :  { %v3751_v31 = vadd.f32 %v858_v30, %v3651_v9 }
 0x4e1   :  { %v855_v35 = vpop.f32.mrf.mxu1 }
 0x4e2   :  { %v864_v32 = vsel %vm164_vm3, %v3751_v31, 0.0  ;;  %v872_v37 = vmul.f32 %v3751_v31, %v3751_v31 }
 0x4e3   :  { %865 = vadd.xlane.f32.xlu2 %v864_v32  ;;  %v770_v33 = vpop.f32.mrf.mxu0 }
 0x4e4   :  { %v777_v34 = vadd.f32 %v3249_v26, %v770_v33  ;;  %v874_v39 = vsel %vm164_vm3, %v872_v37, 0.0  ;;  %v3250_v33 = vld [vmem:[%s4334_s10] ss:$0 sm:$0xff] }
 0x4e6   :  { %v859_v36 = vadd.f32 %v855_v35, %v777_v34 }
 0x4e8   :  { %v3758_v38 = vadd.f32 %v859_v36, %v3653_v10  ;;  %v3159_v10 = vld [vmem:[%s4336_s12 + $0x34] sm:$0xf0] }
 0x4e9   :  { %v2635_v45 = vor.u32 %v3159_v10, %v2634_v43  ;;  %v3175_v10 = vld [vmem:[%s4338_s14 + $0x78] sm:$0xff] }
 0x4ea   :  { %v867_v9 = vsel %vm164_vm3, %v3758_v38, 0.0  ;;  %v873_v40 = vmul.f32 %v3758_v38, %v3758_v38  ;;  %1192 = vmatpush.bf16.msrb.mxu3 %v3175_v10 }
 0x4eb   :  { %875 = vadd.xlane.f32.xlu2 %v874_v39  ;;  %868 = vadd.xlane.f32.xlu1 %v867_v9 }
 0x4ec   :  { %v877_v41 = vsel %vm164_vm3, %v873_v40, 0.0  ;;  %984 = vmatpush.bf16.msra.mxu2 %v2635_v45  ;;  %v3251_v40 = vld [vmem:[%s4335_s11] ss:$0 sm:$0xff]  ;;  %v3174_v45 = vld [vmem:[%s4338_s14 + $0x70] sm:$0xff] }
 0x4ee   :  { %1193 = vmatpush.bf16.msrb.mxu3 %v3174_v45 }
 0x4f0   :  { %985 = vmatpush.bf16.msra.mxu2 %v2627_v53  ;;  %v3162_v53 = vld [vmem:[%s4338_s14 + $0x10] sm:$0xff] }
 0x4f2   :  { %1194 = vmatpush.bf16.msrb.mxu3 %v3173_v48  ;;  %v3252_v48 = vld [vmem:[%s4337_s15] ss:$0 sm:$0xff] }
 0x4f3   :  { %878 = vadd.xlane.f32.xlu1 %v877_v41 }
 0x4f4   :  { %986 = vmatpush.bf16.msra.mxu2 %v2619_v63 }
 0x4f6   :  { %1195 = vmatpush.bf16.msrb.mxu3 %v3172_v50 }
 0x4f8   :  { %987 = vmatpush.bf16.msra.mxu2 %v2611_v8 }
 0x556   :  { %v866_v42 = vpop.xlane.xlu2 %865 }
 0x557   :  { %v870_v52 = vmul.f32 0.015625, %v866_v42 }
 0x559   :  { %v882_v61 = vmul.f32 %v870_v52, %v870_v52  ;;  %v886_v30 = vsub.f32 %v3751_v31, %v870_v52  ;;  %v3171_v52 = vld [vmem:[%s4338_s14 + $0x58] sm:$0xff] }
 0x55a   :  { %1196 = vmatpush.bf16.msrb.mxu3 %v3171_v52 }
 0x55e   :  { %v876_v56 = vpop.xlane.xlu2 %875  ;;  %v869_v57 = vpop.xlane.xlu1 %868  ;;  %1197 = vmatpush.bf16.msrb.mxu3 %v3170_v54 }
 0x55f   :  { %v880_v62 = vmul.f32 0.015625, %v876_v56  ;;  %v871_v11 = vmul.f32 0.015625, %v869_v57  ;;  %v3169_v56 = vld [vmem:[%s4338_s14 + $0x48] sm:$0xff]  ;;  %v931_v57 = vld [vmem:[%s4339_s13] sm:$0x3] }
 0x560   :  { %v933_v60 = vperm.slane %v931_v57, 0 }
 0x561   :  { %v884_v4 = vsub.f32 %v880_v62, %v882_v61  ;;  %v883_v12 = vmul.f32 %v871_v11, %v871_v11  ;;  %v887_v36 = vsub.f32 %v3758_v38, %v871_v11  ;;  %v3167_v38 = vld [vmem:[%s4338_s14 + $0x38] sm:$0xff]  ;;  %v934_v61 = vperm.slane %v931_v57, 1 }
 0x562   :  { %1178 = vmatpush.bf16.msrb.mxu2 %v3167_v38  ;;  %1198 = vmatpush.bf16.msrb.mxu3 %v3169_v56 }
 0x563   :  { %v888_v46 = vadd.f32 1e-12, %v884_v4 }
 0x565   :  { %3282 = vrsqrt.f32 %v888_v46  ;;  %vm896_vm13 = vweird.f32 %v888_v46 }
 0x566   :  { %v879_v7 = vpop.xlane.xlu1 %878  ;;  %1179 = vmatpush.bf16.msrb.mxu2 %v3166_v44  ;;  %1199 = vmatpush.bf16.msrb.mxu3 %v3168_v59 }
 0x567   :  { %v881_v13 = vmul.f32 0.015625, %v879_v7 }
 0x569   :  { %v885_v15 = vsub.f32 %v881_v13, %v883_v12 }
 0x56a   :  { %1180 = vmatpush.bf16.msrb.mxu2 %v3165_v47 }
 0x56b   :  { %v3283_v16 = vpop.eup %3282  ;;  %v889_v17 = vadd.f32 1e-12, %v885_v15 }
 0x56c   :  { %v891_v19 = vmul.f32 %v3283_v16, %v888_v46  ;;  %vm897_vm12 = vweird.f32 %v3283_v16 }
 0x56d   :  { %3284 = vrsqrt.f32 %v889_v17  ;;  %vm898_vm14 = vmor %vm896_vm13, %vm897_vm12  ;;  %vm906_vm0 = vweird.f32 %v889_v17 }
 0x56e   :  { %v892_v20 = vmul.f32 %v3283_v16, %v891_v19  ;;  %1181 = vmatpush.bf16.msrb.mxu2 %v3164_v49 }
 0x570   :  { %v893_v21 = vmul.f32 0.5, %v892_v20 }
 0x572   :  { %v894_v22 = vsub.f32 1.5, %v893_v21  ;;  %1182 = vmatpush.bf16.msrb.mxu2 %v3163_v51 }
 0x573   :  { %v3285_v24 = vpop.eup %3284 }
 0x574   :  { %v895_v25 = vmul.f32 %v3283_v16, %v894_v22  ;;  %v901_v26 = vmul.f32 %v3285_v24, %v889_v17  ;;  %vm907_vm15 = vweird.f32 %v3285_v24 }
 0x575   :  { %vm908_vm1 = vmor %vm906_vm0, %vm907_vm15 }
 0x576   :  { %v902_v27 = vmul.f32 %v3285_v24, %v901_v26  ;;  %v899_v28 = vsel %vm898_vm14, %v3283_v16, %v895_v25  ;;  %1183 = vmatpush.bf16.msrb.mxu2 %v3162_v53 }
 0x577   :  { %v910_v34 = vmul.f32 %v899_v28, %v886_v30 }
 0x578   :  { %v903_v29 = vmul.f32 0.5, %v902_v27 }
 0x579   :  { %v915_v39 = vmul.f32 %v3250_v33, %v910_v34 }
 0x57a   :  { %v904_v32 = vsub.f32 1.5, %v903_v29  ;;  %1184 = vmatpush.bf16.msrb.mxu2 %v3161_v55 }
 0x57b   :  { %v3822_v41 = vadd.f32 %v3251_v40, %v915_v39 }
 0x57c   :  { %v905_v35 = vmul.f32 %v3285_v24, %v904_v32 }
 0x57e   :  { %v909_v37 = vsel %vm908_vm1, %v3285_v24, %v905_v35  ;;  %1185 = vmatpush.bf16.msrb.mxu2 %v3160_v58 }
 0x57f   :  { %v911_v9 = vmul.f32 %v909_v37, %v887_v36 }
 0x581   :  { %v916_v31 = vmul.f32 %v3250_v33, %v911_v9 }
 0x583   :  { %v3824_v42 = vadd.f32 %v3251_v40, %v916_v31 }
 0x585   :  { %v930_v43 = vpack.c.bf16 %v3824_v42, %v3822_v41 }
 0x587   :  { %2640 = vmatmul.msk.bf16.vlgmr.msra.gmra.mxu2 %vm164_vm3, %v930_v43  ;;  %2641 = vmatmul.msk.bf16.vlgmr.msra.gmra.mxu3 %vm164_vm3, %v930_v43 }
 0x60a   :  { %v989_v62 = vpop.f32.mrf.mxu2  ;;  %v1003_v63 = vpop.f32.mrf.mxu3 }
 0x60b   :  { %v990_v0 = vadd.f32 %v989_v62, %v933_v60  ;;  %v1004_v2 = vadd.f32 %v1003_v63, %v934_v61 }
 0x60d   :  { %v1012_v4 = vmul.f32 0.044715, %v990_v0  ;;  %v1013_v3 = vmul.f32 0.044715, %v1004_v2  ;;  %v1008_v36 = vmul.f32 0.5, %v990_v0  ;;  %v1009_v9 = vmul.f32 0.5, %v1004_v2 }
 0x60f   :  { %v1016_v5 = vmul.f32 %v1012_v4, %v990_v0  ;;  %v1017_v6 = vmul.f32 %v1013_v3, %v1004_v2  ;;  %v2763_v3 = vld [vmem:[%s4329_s6 + $0x114] sm:$0xf0] }
 0x611   :  { %v1020_v8 = vmul.f32 %v1016_v5, %v990_v0  ;;  %v1021_v18 = vmul.f32 %v1017_v6, %v1004_v2  ;;  %v3197_v5 = vld [vmem:[%s4329_s6 + $0x16c] sm:$0xf]  ;;  %v2831_v6 = vld [vmem:[%s4329_s6 + $0x174] sm:$0xf0] }
 0x612   :  { %v991_v46 = vpop.f32.mrf.mxu2  ;;  %v1005_v11 = vpop.f32.mrf.mxu3 }
 0x613   :  { %v1024_v23 = vadd.f32 %v1020_v8, %v990_v0  ;;  %v992_v7 = vadd.f32 %v991_v46, %v933_v60  ;;  %v1006_v12 = vadd.f32 %v1005_v11, %v934_v61  ;;  %v1025_v13 = vadd.f32 %v1021_v18, %v1004_v2  ;;  %v2761_v0 = vld [vmem:[%s4329_s6 + $0x108] sm:$0xf]  ;;  %v3186_v2 = vld [vmem:[%s4329_s6 + $0x110] sm:$0xf0]  ;;  %v2837_v46 = vld [vmem:[%s4329_s6 + $0x170] sm:$0xf] }
 0x614   :  { %v2762_v4 = vor.u32 %v3186_v2, %v2761_v0  ;;  %v2834_v18 = vor.u32 %v3197_v5, %v2831_v6  ;;  %v3199_v11 = vld [vmem:[%s4329_s6 + $0x178] sm:$0xf0]  ;;  %v2829_v0 = vld [vmem:[%s4329_s6 + $0x168] sm:$0xf]  ;;  %v2757_v6 = vld [vmem:[%s4329_s6 + $0xf8] sm:$0xf] }
 0x615   :  { %v1014_v15 = vmul.f32 0.044715, %v992_v7  ;;  %v1015_v16 = vmul.f32 0.044715, %v1006_v12  ;;  %v1028_v17 = vmul.f32 0.7978846, %v1024_v23  ;;  %v2838_v23 = vor.u32 %v3199_v11, %v2837_v46 }
 0x616   :  { %v1029_v20 = vmul.f32 0.7978846, %v1025_v13  ;;  %v1010_v37 = vmul.f32 0.5, %v992_v7  ;;  %v1011_v40 = vmul.f32 0.5, %v1006_v12  ;;  %1366 = vmatpush.bf16.msra.mxu0 %v2762_v4  ;;  %1512 = vmatpush.bf16.msra.mxu2 %v2834_v18  ;;  %v3182_v13 = vld [vmem:[%s4329_s6 + $0xf4] sm:$0xf] }
 0x617   :  { %v1018_v19 = vmul.f32 %v1014_v15, %v992_v7  ;;  %v1019_v21 = vmul.f32 %v1015_v16, %v1006_v12  ;;  %3286 = vtanh.f32 %v1028_v17  ;;  %1526 = vmatpush.bf16.msra.mxu3 %v2838_v23  ;;  %v2751_v16 = vld [vmem:[%s4329_s6 + $0xfc] sm:$0xf0]  ;;  %v3194_v17 = vld [vmem:[%s4329_s6 + $0x154] sm:$0xf]  ;;  %v2817_v18 = vld [vmem:[%s4329_s6 + $0x150] sm:$0xf] }
 0x618   :  { %3288 = vtanh.f32 %v1029_v20  ;;  %v3195_v23 = vld [vmem:[%s4329_s6 + $0x158] sm:$0xf0] }
 0x619   :  { %v1022_v22 = vmul.f32 %v1018_v19, %v992_v7  ;;  %v1023_v24 = vmul.f32 %v1019_v21, %v1006_v12  ;;  %v2819_v19 = vld [vmem:[%s4329_s6 + $0x15c] sm:$0xf0]  ;;  %v2754_v21 = vor.u32 %v3182_v13, %v2751_v16  ;;  %v3181_v13 = vld [vmem:[%s4329_s6 + $0xe8] sm:$0xf0] }
 0x61b   :  { %v1026_v25 = vadd.f32 %v1022_v22, %v992_v7  ;;  %v1027_v26 = vadd.f32 %v1023_v24, %v1006_v12  ;;  %v2749_v7 = vld [vmem:[%s4329_s6 + $0xf0] sm:$0xf]  ;;  %v3183_v12 = vld [vmem:[%s4329_s6 + $0xf8] sm:$0xf0]  ;;  %v2822_v22 = vor.u32 %v3194_v17, %v2819_v19  ;;  %v2825_v24 = vld [vmem:[%s4329_s6 + $0x158] sm:$0xf] }
 0x61c   :  { %v2750_v15 = vor.u32 %v3183_v12, %v2749_v7  ;;  %v2818_v7 = vor.u32 %v3195_v23, %v2817_v18  ;;  %v2745_v12 = vld [vmem:[%s4329_s6 + $0xe0] sm:$0xf]  ;;  %v2805_v17 = vld [vmem:[%s4329_s6 + $0x138] sm:$0xf]  ;;  %v3192_v19 = vld [vmem:[%s4329_s6 + $0x140] sm:$0xf0] }
 0x61d   :  { %v1030_v27 = vmul.f32 0.7978846, %v1026_v25  ;;  %v1031_v28 = vmul.f32 0.7978846, %v1027_v26  ;;  %v3287_v29 = vpop.eup %3286  ;;  %v3196_v25 = vld [vmem:[%s4329_s6 + $0x160] sm:$0xf0]  ;;  %1513 = vmatpush.bf16.msra.mxu2 %v2822_v22 }
 0x61e   :  { %v3289_v30 = vpop.eup %3288  ;;  %v1036_v32 = vadd.f32 1.0, %v3287_v29  ;;  %1367 = vmatpush.bf16.msra.mxu0 %v2750_v15  ;;  %v2737_v29 = vld [vmem:[%s4329_s6 + $0xd8] sm:$0xf] }
 0x61f   :  { %3290 = vtanh.f32 %v1030_v27  ;;  %v1037_v34 = vadd.f32 1.0, %v3289_v30  ;;  %v2826_v27 = vor.u32 %v3196_v25, %v2825_v24  ;;  %v3180_v30 = vld [vmem:[%s4329_s6 + $0xe0] sm:$0xf0]  ;;  %v2806_v24 = vor.u32 %v3192_v19, %v2805_v17  ;;  %v2733_v25 = vld [vmem:[%s4329_s6 + $0xc8] sm:$0xf] }
 0x620   :  { %3292 = vtanh.f32 %v1031_v28  ;;  %v1040_v43 = vmul.f32 %v1036_v32, %v1008_v36  ;;  %v3179_v32 = vld [vmem:[%s4329_s6 + $0xdc] sm:$0xf]  ;;  %v2739_v36 = vld [vmem:[%s4329_s6 + $0xe4] sm:$0xf0] }
 0x621   :  { %v1041_v10 = vmul.f32 %v1037_v34, %v1009_v9  ;;  %1527 = vmatpush.bf16.msra.mxu3 %v2826_v27  ;;  %v2807_v9 = vld [vmem:[%s4329_s6 + $0x144] sm:$0xf0]  ;;  %v3178_v27 = vld [vmem:[%s4329_s6 + $0xd0] sm:$0xf0] }
 0x625   :  { %v3291_v33 = vpop.eup %3290 }
 0x626   :  { %v3293_v35 = vpop.eup %3292  ;;  %v1038_v39 = vadd.f32 1.0, %v3291_v33 }
 0x627   :  { %v1039_v31 = vadd.f32 1.0, %v3293_v35  ;;  %v2738_v35 = vor.u32 %v3180_v30, %v2737_v29  ;;  %v3189_v29 = vld [vmem:[%s4329_s6 + $0x128] sm:$0xf0] }
 0x628   :  { %v1042_v38 = vmul.f32 %v1038_v39, %v1010_v37  ;;  %v3191_v37 = vld [vmem:[%s4329_s6 + $0x13c] sm:$0xf]  ;;  %v2742_v39 = vor.u32 %v3179_v32, %v2739_v36  ;;  %v2734_v32 = vor.u32 %v3178_v27, %v2733_v25 }
 0x629   :  { %v1043_v44 = vmul.f32 %v1039_v31, %v1011_v40  ;;  %v2813_v40 = vld [vmem:[%s4329_s6 + $0x140] sm:$0xf]  ;;  %v3193_v31 = vld [vmem:[%s4329_s6 + $0x148] sm:$0xf0]  ;;  %1368 = vmatpush.bf16.msra.mxu0 %v2738_v35 }
 0x62a   :  { %v1076_v45 = vpack.c.bf16 %v1042_v38, %v1040_v43  ;;  %v2810_v38 = vor.u32 %v3191_v37, %v2807_v9 }
 0x62b   :  { %v1077_v47 = vpack.c.bf16 %v1043_v44, %v1041_v10  ;;  %v2814_v10 = vor.u32 %v3193_v31, %v2813_v40  ;;  %v2725_v44 = vld [vmem:[%s4329_s6 + $0xc0] sm:$0xf] }
 0x62c   :  { %1186 = vmatmul.bf16.vlgmr.msrb.gmra.mxu2 %v1076_v45  ;;  %v3177_v45 = vld [vmem:[%s4329_s6 + $0xc8] sm:$0xf0] }
 0x62d   :  { %1200 = vmatmul.bf16.vlgmr.msrb.gmra.mxu3 %v1077_v47  ;;  %v3176_v47 = vld [vmem:[%s4329_s6 + $0xc4] sm:$0xf]  ;;  %1514 = vmatpush.bf16.msra.mxu2 %v2810_v38  ;;  %v3253_v38 = vld [vmem:[%s4340_s16] ss:$0 sm:$0xff] }
 0x62e   :  { %1528 = vmatpush.bf16.msra.mxu3 %v2814_v10 }
 0x6af   :  { %v1187_v49 = vpop.f32.mrf.mxu2 }
 0x6b0   :  { %v1188_v50 = vadd.f32 %v3252_v48, %v1187_v49  ;;  %v1201_v51 = vpop.f32.mrf.mxu3  ;;  %v2726_v49 = vor.u32 %v3177_v45, %v2725_v44 }
 0x6b2   :  { %v1202_v52 = vadd.f32 %v1201_v51, %v1188_v50  ;;  %v2727_v50 = vld [vmem:[%s4329_s6 + $0xcc] sm:$0xf0]  ;;  %v3188_v51 = vld [vmem:[%s4329_s6 + $0x124] sm:$0xf]  ;;  %1369 = vmatpush.bf16.msra.mxu0 %v2726_v49 }
 0x6b4   :  { %v3885_v53 = vadd.f32 %v1202_v52, %v3822_v41 }
 0x6b6   :  { %v1210_v54 = vsel %vm164_vm3, %v3885_v53, 0.0  ;;  %v1218_v55 = vmul.f32 %v3885_v53, %v3885_v53 }
 0x6b7   :  { %v1189_v56 = vpop.f32.mrf.mxu2  ;;  %1211 = vadd.xlane.f32.xlu2 %v1210_v54  ;;  %v2730_v54 = vor.u32 %v3176_v47, %v2727_v50 }
 0x6b8   :  { %v1190_v57 = vadd.f32 %v3252_v48, %v1189_v56  ;;  %v1220_v58 = vsel %vm164_vm3, %v1218_v55, 0.0  ;;  %v1203_v59 = vpop.f32.mrf.mxu3  ;;  %v2795_v55 = vld [vmem:[%s4329_s6 + $0x12c] sm:$0xf0]  ;;  %v2801_v56 = vld [vmem:[%s4329_s6 + $0x128] sm:$0xf] }
 0x6b9   :  { %1221 = vadd.xlane.f32.xlu1 %v1220_v58 }
 0x6ba   :  { %v1204_v60 = vadd.f32 %v1203_v59, %v1190_v57  ;;  %v3190_v57 = vld [vmem:[%s4329_s6 + $0x130] sm:$0xf0]  ;;  %v2798_v59 = vor.u32 %v3188_v51, %v2795_v55 }
 0x6bc   :  { %v3893_v61 = vadd.f32 %v1204_v60, %v3824_v42  ;;  %v3185_v42 = vld [vmem:[%s4329_s6 + $0x10c] sm:$0xf]  ;;  %1515 = vmatpush.bf16.msra.mxu2 %v2798_v59 }
 0x6bd   :  { %v2766_v8 = vor.u32 %v3185_v42, %v2763_v3  ;;  %v3198_v3 = vld [vmem:[%s4329_s6 + $0x170] sm:$0xf0] }
 0x6be   :  { %v1213_v41 = vsel %vm164_vm3, %v3893_v61, 0.0  ;;  %v1219_v62 = vmul.f32 %v3893_v61, %v3893_v61  ;;  %v2830_v5 = vor.u32 %v3198_v3, %v2829_v0 }
 0x6bf   :  { %1214 = vadd.xlane.f32.xlu0 %v1213_v41  ;;  %1380 = vmatpush.bf16.msrb.mxu1 %v2766_v8  ;;  %v2802_v41 = vor.u32 %v3190_v57, %v2801_v56  ;;  %v3184_v8 = vld [vmem:[%s4329_s6 + $0x100] sm:$0xf0] }
 0x6c0   :  { %v1223_v63 = vsel %vm164_vm3, %v1219_v62, 0.0  ;;  %v2769_v62 = vld [vmem:[%s4329_s6 + $0x110] sm:$0xf]  ;;  %v2758_v11 = vor.u32 %v3184_v8, %v2757_v6 }
 0x6c1   :  { %1224 = vadd.xlane.f32.xlu2 %v1223_v63  ;;  %v3187_v63 = vld [vmem:[%s4329_s6 + $0x118] sm:$0xf0]  ;;  %1529 = vmatpush.bf16.msra.mxu3 %v2802_v41 }
 0x6c2   :  { %v2770_v4 = vor.u32 %v3187_v63, %v2769_v62 }
 0x6c3   :  { %1381 = vmatpush.bf16.msrb.mxu1 %v2754_v21  ;;  %v2746_v21 = vor.u32 %v3181_v13, %v2745_v12 }
 0x6c4   :  { %1394 = vmatpush.bf16.msrb.mxu0 %v2770_v4 }
 0x6c7   :  { %1382 = vmatpush.bf16.msrb.mxu1 %v2742_v39 }
 0x6c8   :  { %1395 = vmatpush.bf16.msrb.mxu0 %v2758_v11 }
 0x6cb   :  { %1383 = vmatpush.bf16.msrb.mxu1 %v2730_v54 }
 0x6cc   :  { %1396 = vmatpush.bf16.msrb.mxu0 %v2746_v21 }
 0x6cf   :  { %1498 = vmatpush.bf16.msra.mxu1 %v2830_v5 }
 0x6d0   :  { %1397 = vmatpush.bf16.msrb.mxu0 %v2734_v32 }
 0x6d3   :  { %1499 = vmatpush.bf16.msra.mxu1 %v2818_v7 }
 0x6d7   :  { %1500 = vmatpush.bf16.msra.mxu1 %v2806_v24 }
 0x72a   :  { %v1212_v20 = vpop.xlane.xlu2 %1211 }
 0x72b   :  { %v3948_v26 = vmul.f32 0.015625, %v1212_v20 }
 0x72c   :  { %v1222_v28 = vpop.xlane.xlu1 %1221 }
 0x72d   :  { %v1228_v33 = vmul.f32 %v3948_v26, %v3948_v26  ;;  %v1226_v34 = vmul.f32 0.015625, %v1222_v28  ;;  %v2793_v28 = vld [vmem:[%s4329_s6 + $0x120] sm:$0xf]  ;;  %v1232_v31 = vsub.f32 %v3885_v53, %v3948_v26 }
 0x72f   :  { %v1230_v43 = vsub.f32 %v1226_v34, %v1228_v33  ;;  %v2794_v34 = vor.u32 %v3189_v29, %v2793_v28 }
 0x731   :  { %v3985_v48 = vadd.f32 1e-12, %v1230_v43  ;;  %1501 = vmatpush.bf16.msra.mxu1 %v2794_v34 }
 0x732   :  { %v1215_v52 = vpop.xlane.xlu0 %1214 }
 0x733   :  { %3294 = vrsqrt.f32 %v3985_v48  ;;  %v4003_v58 = vmul.f32 0.015625, %v1215_v52  ;;  %vm1242_vm4 = vweird.f32 %v3985_v48 }
 0x734   :  { %v1225_v60 = vpop.xlane.xlu2 %1224 }
 0x735   :  { %v1229_v2 = vmul.f32 %v4003_v58, %v4003_v58  ;;  %v1227_v42 = vmul.f32 0.015625, %v1225_v60  ;;  %v1233_v45 = vsub.f32 %v3893_v61, %v4003_v58  ;;  %v2722_v61 = vld [vmem:[%s4330_s7 + $0x6] sm:$0x7]  ;;  %v2790_v58 = vld [vmem:[%s4330_s7 + $0x9] sm:$0x7] }
 0x736   :  { %v1290_v54 = vperm.slane %v2722_v61, 1  ;;  %v1289_v59 = vperm.slane %v2722_v61, 0  ;;  %v1425_v41 = vperm.slane %v2790_v58, 1  ;;  %v1426_v62 = vperm.slane %v2790_v58, 2 }
 0x737   :  { %v1231_v46 = vsub.f32 %v1227_v42, %v1229_v2  ;;  %v1291_v7 = vperm.slane %v2722_v61, 2  ;;  %v1424_v12 = vperm.slane %v2790_v58, 0 }
 0x739   :  { %v3295_v15 = vpop.eup %3294  ;;  %v1235_v16 = vadd.f32 1e-12, %v1231_v46 }
 0x73a   :  { %v1237_v20 = vmul.f32 %v3295_v15, %v3985_v48  ;;  %vm1243_vm2 = vweird.f32 %v3295_v15  ;;  %v3254_v48 = vld [vmem:[%s4341_s17] ss:$0 sm:$0xff] }
 0x73b   :  { %3296 = vrsqrt.f32 %v1235_v16  ;;  %vm1244_vm5 = vmor %vm1242_vm4, %vm1243_vm2  ;;  %vm1252_vm7 = vweird.f32 %v1235_v16 }
 0x73c   :  { %v1238_v22 = vmul.f32 %v3295_v15, %v1237_v20 }
 0x73e   :  { %v1239_v30 = vmul.f32 0.5, %v1238_v22 }
 0x740   :  { %v1240_v33 = vsub.f32 1.5, %v1239_v30 }
 0x741   :  { %v3297_v35 = vpop.eup %3296 }
 0x742   :  { %v1241_v36 = vmul.f32 %v3295_v15, %v1240_v33  ;;  %v1247_v37 = vmul.f32 %v3297_v35, %v1235_v16  ;;  %vm1253_vm6 = vweird.f32 %v3297_v35 }
 0x743   :  { %vm1254_vm8 = vmor %vm1252_vm7, %vm1253_vm6 }
 0x744   :  { %v1248_v39 = vmul.f32 %v3297_v35, %v1247_v37  ;;  %v1245_v9 = vsel %vm1244_vm5, %v3295_v15, %v1241_v36 }
 0x745   :  { %v1256_v10 = vmul.f32 %v1245_v9, %v1232_v31 }
 0x746   :  { %v1249_v40 = vmul.f32 0.5, %v1248_v39 }
 0x747   :  { %v1261_v49 = vmul.f32 %v3253_v38, %v1256_v10 }
 0x748   :  { %v1250_v43 = vsub.f32 1.5, %v1249_v40 }
 0x749   :  { %v4067_v50 = vadd.f32 %v3254_v48, %v1261_v49 }
 0x74a   :  { %v1251_v44 = vmul.f32 %v3297_v35, %v1250_v43 }
 0x74c   :  { %v1255_v47 = vsel %vm1254_vm8, %v3297_v35, %v1251_v44 }
 0x74d   :  { %v1257_v53 = vmul.f32 %v1255_v47, %v1233_v45 }
 0x74f   :  { %v1262_v26 = vmul.f32 %v3253_v38, %v1257_v53 }
 0x751   :  { %v4069_v51 = vadd.f32 %v3254_v48, %v1262_v26 }
 0x753   :  { %v1268_v52 = vpack.c.bf16 %v4069_v51, %v4067_v50 }
 0x755   :  { %2771 = vmatmul.msk.bf16.vlgmr.msra.gmra.mxu0 %vm164_vm3, %v1268_v52  ;;  %2772 = vmatmul.msk.bf16.vlgmr.msrb.gmra.mxu1 %vm164_vm3, %v1268_v52 }
 0x756   :  { %2840 = vmatmul.msk.bf16.vlgmr.msra.gmra.mxu2 %vm164_vm3, %v1268_v52  ;;  %2841 = vmatmul.msk.bf16.vlgmr.msra.gmra.mxu3 %vm164_vm3, %v1268_v52 }
 0x765   :  { %2773 = vmatmul.msk.bf16.vlgmr.msrb.gmra.mxu0 %vm164_vm3, %v1268_v52  ;;  %2839 = vmatmul.msk.bf16.vlgmr.msra.gmra.mxu1 %vm164_vm3, %v1268_v52 }
 0x7d2   :  { %v1371_v55 = vpop.f32.mrf.mxu0  ;;  %v1385_v56 = vpop.f32.mrf.mxu1 }
 0x7d3   :  { %v1386_v57 = vadd.f32 %v1385_v56, %v1290_v54  ;;  %v1372_v63 = vadd.f32 %v1371_v55, %v1289_v59 }
 0x7d5   :  { %v1540_v60 = vpack.c.bf16 %v1386_v57, %v1386_v57  ;;  %v1536_v8 = vpack.c.bf16 %v1372_v63, %v1372_v63 }
 0x7d7   :  { %1551 = vmatpush.bf16.xpose.msra.mxu0 %v1540_v60 }
 0x7d9   :  { %v1517_v0 = vpop.f32.mrf.mxu2  ;;  %v1531_v2 = vpop.f32.mrf.mxu3 }
 0x7da   :  { %v1518_v42 = vadd.f32 %v1517_v0, %v1425_v41  ;;  %v1532_v4 = vadd.f32 %v1531_v2, %v1426_v62  ;;  %v1373_v3 = vpop.f32.mrf.mxu0  ;;  %v1387_v5 = vpop.f32.mrf.mxu1 }
 0x7db   :  { %v1388_v6 = vadd.f32 %v1387_v5, %v1290_v54  ;;  %v1374_v13 = vadd.f32 %v1373_v3, %v1289_v59 }
 0x7dc   :  { %v1542_v18 = vpack.c.bf16 %v1518_v42, %v1518_v42  ;;  %v1646_v46 = vpack.c.bf16 %v1532_v4, %v1532_v4 }
 0x7dd   :  { %v1541_v11 = vpack.c.bf16 %v1388_v6, %v1388_v6  ;;  %v1537_v25 = vpack.c.bf16 %v1374_v13, %v1374_v13 }
 0x7de   :  { %v1690_v23 = vsel %vm619_vm10, %v1646_v46, 0  ;;  %1577 = vmatpush.bf16.xpose.msrb.mxu2 %v1542_v18  ;;  %1552 = vmatmul.bf16.vlgmr.msra.gmra.mxu0 %v1536_v8 }
 0x7df   :  { %1564 = vmatpush.bf16.xpose.msrb.mxu1 %v1541_v11 }
 0x7e1   :  { %v1519_v15 = vpop.f32.mrf.mxu2  ;;  %v1533_v16 = vpop.f32.mrf.mxu3 }
 0x7e2   :  { %v1520_v17 = vadd.f32 %v1519_v15, %v1425_v41  ;;  %v1534_v19 = vadd.f32 %v1533_v16, %v1426_v62  ;;  %v1399_v20 = vpop.f32.mrf.mxu0  ;;  %v1503_v21 = vpop.f32.mrf.mxu1 }
 0x7e3   :  { %v1400_v22 = vadd.f32 %v1399_v20, %v1291_v7  ;;  %v1504_v24 = vadd.f32 %v1503_v21, %v1424_v12 }
 0x7e4   :  { %v1543_v27 = vpack.c.bf16 %v1520_v17, %v1520_v17  ;;  %v1647_v28 = vpack.c.bf16 %v1534_v19, %v1534_v19 }
 0x7e5   :  { %v1644_v29 = vpack.c.bf16 %v1400_v22, %v1400_v22  ;;  %v1538_v30 = vpack.c.bf16 %v1504_v24, %v1504_v24 }
 0x7e6   :  { %1699 = vmatpush.bf16.msra.mxu2 %v1690_v23  ;;  %v1709_v32 = vsel %vm619_vm10, %v1647_v28, 0  ;;  %1590 = vmatpush.bf16.xpose.msrb.mxu3 %v1543_v27 }
 0x7e7   :  { %1565 = vmatmul.bf16.vlgmr.msrb.gmra.mxu1 %v1537_v25  ;;  %v1652_v33 = vsel %vm619_vm10, %v1644_v29, 0  ;;  %1578 = vmatmul.bf16.vlgmr.msrb.gmra.mxu2 %v1538_v30 }
 0x7e8   :  { %1661 = vmatpush.bf16.msrb.mxu0 %v1652_v33  ;;  %v3215_v33 = vld [vmem:[%s4332_s8 + $0xf8] sm:$0xff] }
 0x7ea   :  { %v1401_v34 = vpop.f32.mrf.mxu0  ;;  %v1505_v35 = vpop.f32.mrf.mxu1 }
 0x7eb   :  { %v1402_v36 = vadd.f32 %v1401_v34, %v1291_v7  ;;  %v1506_v37 = vadd.f32 %v1505_v35, %v1424_v12  ;;  %v3207_v7 = vld [vmem:[%s4332_s8 + $0xb8] sm:$0xff]  ;;  %v3206_v12 = vld [vmem:[%s4332_s8 + $0xb0] sm:$0xff]  ;;  %v3205_v34 = vld [vmem:[%s4332_s8 + $0xa8] sm:$0xff] }
 0x7ec   :  { %1792 = vmatpush.bf16.msra.mxu0 %v3207_v7  ;;  %v3214_v35 = vld [vmem:[%s4332_s8 + $0xf0] sm:$0xff]  ;;  %v2972_v7 = vld [vmem:[%s4336_s12 + $0x60] sm:$0xf] }
 0x7ed   :  { %v1645_v39 = vpack.c.bf16 %v1402_v36, %v1402_v36  ;;  %v1539_v9 = vpack.c.bf16 %v1506_v37, %v1506_v37  ;;  %v3204_v36 = vld [vmem:[%s4332_s8 + $0xa0] sm:$0xff]  ;;  %v3213_v37 = vld [vmem:[%s4332_s8 + $0xe8] sm:$0xff] }
 0x7ee   :  { %1718 = vmatpush.bf16.msra.mxu3 %v1709_v32 }
 0x7ef   :  { %v1671_v40 = vsel %vm619_vm10, %v1645_v39, 0  ;;  %1591 = vmatmul.bf16.vlgmr.msrb.gmra.mxu3 %v1539_v9  ;;  %v3203_v39 = vld [vmem:[%s4332_s8 + $0x98] sm:$0xff]  ;;  %v3212_v9 = vld [vmem:[%s4332_s8 + $0xe0] sm:$0xff] }
 0x7f0   :  { %1680 = vmatpush.bf16.msra.mxu1 %v1671_v40  ;;  %1793 = vmatpush.bf16.msra.mxu0 %v3206_v12  ;;  %v3202_v40 = vld [vmem:[%s4332_s8 + $0x90] sm:$0xff]  ;;  %v3221_v12 = vld [vmem:[%s4336_s12 + $0x64] sm:$0xf0] }
 0x7f4   :  { %1877 = vmatpush.bf16.msrb.mxu1 %v3215_v33  ;;  %1794 = vmatpush.bf16.msra.mxu0 %v3205_v34  ;;  %v2956_v34 = vld [vmem:[%s4336_s12 + $0x40] sm:$0xf] }
 0x7f8   :  { %1878 = vmatpush.bf16.msrb.mxu1 %v3214_v35  ;;  %1795 = vmatpush.bf16.msra.mxu0 %v3204_v36  ;;  %v3217_v35 = vld [vmem:[%s4336_s12 + $0x44] sm:$0xf0]  ;;  %v3216_v36 = vld [vmem:[%s4336_s12 + $0x44] sm:$0xf] }
 0x7fc   :  { %1879 = vmatpush.bf16.msrb.mxu1 %v3213_v37  ;;  %1796 = vmatpush.bf16.msra.mxu0 %v3203_v39  ;;  %v2957_v37 = vor.u32 %v3217_v35, %v2956_v34  ;;  %v2958_v39 = vld [vmem:[%s4336_s12 + $0x48] sm:$0xf0] }
 0x800   :  { %1880 = vmatpush.bf16.msrb.mxu1 %v3212_v9  ;;  %1797 = vmatpush.bf16.msra.mxu0 %v3202_v40  ;;  %v2961_v40 = vor.u32 %v3216_v36, %v2958_v39 }
 0x85b   :  { %v1553_v31 = vpop.f32.mrf.mxu0 }
 0x85c   :  { %v1554_v43 = vadd.f32 %v1553_v31, %v3676_v1  ;;  %v3211_v31 = vld [vmem:[%s4332_s8 + $0xd8] sm:$0xff] }
 0x85d   :  { %1881 = vmatpush.bf16.msrb.mxu1 %v3211_v31 }
 0x85e   :  { %v1596_v38 = vsel %vm563_vm11, %v1554_v43, -inf }
 0x85f   :  { %1597 = vmax.xlane.f32.xlu2 %v1596_v38  ;;  %v3210_v38 = vld [vmem:[%s4332_s8 + $0xd0] sm:$0xff] }
 0x861   :  { %1882 = vmatpush.bf16.msrb.mxu1 %v3210_v38 }
 0x863   :  { %v1555_v10 = vpop.f32.mrf.mxu0 }
 0x864   :  { %v1566_v44 = vpop.f32.mrf.mxu1  ;;  %v3200_v10 = vld [vmem:[%s4332_s8 + $0x80] sm:$0xff] }
 0x865   :  { %v1567_v53 = vadd.f32 %v1566_v44, %v3685_v14  ;;  %v3209_v44 = vld [vmem:[%s4332_s8 + $0xc8] sm:$0xff] }
 0x866   :  { %1883 = vmatpush.bf16.msrb.mxu1 %v3209_v44 }
 0x867   :  { %v1599_v55 = vsel %vm563_vm11, %v1567_v53, -inf }
 0x86a   :  { %v1579_v45 = vpop.f32.mrf.mxu2 }
 0x86b   :  { %v1580_v47 = vadd.f32 %v1579_v45, %v3676_v1  ;;  %v3208_v45 = vld [vmem:[%s4332_s8 + $0xc0] sm:$0xff] }
 0x86c   :  { %v1568_v48 = vpop.f32.mrf.mxu1  ;;  %1884 = vmatpush.bf16.msrb.mxu1 %v3208_v45 }
 0x86d   :  { %v1602_v49 = vsel %vm563_vm11, %v1580_v47, -inf }
 0x86e   :  { %1603 = vmax.xlane.f32.xlu0 %v1602_v49 }
 0x872   :  { %v1581_v26 = vpop.f32.mrf.mxu2  ;;  %v1592_v52 = vpop.f32.mrf.mxu3 }
 0x873   :  { %v1593_v61 = vadd.f32 %v1592_v52, %v3685_v14 }
 0x875   :  { %v1605_v54 = vsel %vm563_vm11, %v1593_v61, -inf }
 0x876   :  { %1606 = vmax.xlane.f32.xlu1 %v1605_v54  ;;  %1600 = vmax.xlane.f32.xlu0 %v1599_v55 }
 0x87a   :  { %v1594_v56 = vpop.f32.mrf.mxu3 }
 0x8d2   :  { %v1598_v57 = vpop.xlane.xlu2 %1597 }
 0x8d3   :  { %v1608_v58 = vsub.f32 %v1554_v43, %v1598_v57  ;;  %v3201_v43 = vld [vmem:[%s4332_s8 + $0x88] sm:$0xff] }
 0x8d4   :  { %1798 = vmatpush.bf16.msra.mxu0 %v3201_v43 }
 0x8d5   :  { %v1612_v1 = vmul.f32 1.442695, %v1608_v58  ;;  %v3255_v58 = vld [vmem:[%s4333_s9 + $0x1] ss:$0 sm:$0xff] }
 0x8d7   :  { %3298 = vpow2.f32 %v1612_v1 }
 0x8d8   :  { %1799 = vmatpush.bf16.msra.mxu0 %v3200_v10 }
 0x8dd   :  { %v3299_v59 = vpop.eup %3298 }
 0x8de   :  { %v1620_v60 = vsel %vm563_vm11, %v3299_v59, 0.0 }
 0x8df   :  { %1621 = vadd.xlane.f32.xlu0 %v1620_v60 }
 0x8e1   :  { %v1604_v41 = vpop.xlane.xlu0 %1603 }
 0x8e2   :  { %v1610_v62 = vsub.f32 %v1580_v47, %v1604_v41 }
 0x8e4   :  { %v1616_v63 = vmul.f32 1.442695, %v1610_v62 }
 0x8e6   :  { %3300 = vpow2.f32 %v1616_v63 }
 0x8e9   :  { %v1607_v14 = vpop.xlane.xlu1 %1606  ;;  %v1601_v0 = vpop.xlane.xlu0 %1600 }
 0x8ea   :  { %v1611_v2 = vsub.f32 %v1593_v61, %v1607_v14  ;;  %v1609_v42 = vsub.f32 %v1567_v53, %v1601_v0 }
 0x8ec   :  { %v3301_v4 = vpop.eup %3300  ;;  %v1618_v3 = vmul.f32 1.442695, %v1611_v2  ;;  %v1614_v5 = vmul.f32 1.442695, %v1609_v42 }
 0x8ed   :  { %v1626_v6 = vsel %vm563_vm11, %v3301_v4, 0.0 }
 0x8ee   :  { %3302 = vpow2.f32 %v1618_v3  ;;  %1627 = vadd.xlane.f32.xlu1 %v1626_v6 }
 0x8ef   :  { %3304 = vpow2.f32 %v1614_v5 }
 0x8f4   :  { %v3303_v8 = vpop.eup %3302 }
 0x8f5   :  { %v3305_v18 = vpop.eup %3304  ;;  %v1629_v46 = vsel %vm563_vm11, %v3303_v8, 0.0 }
 0x8f6   :  { %v1623_v11 = vsel %vm563_vm11, %v3305_v18, 0.0  ;;  %1630 = vadd.xlane.f32.xlu2 %v1629_v46 }
 0x8f7   :  { %1624 = vadd.xlane.f32.xlu1 %v1623_v11  ;;  %v2982_v11 = vld [vmem:[%s4336_s12 + $0x78] sm:$0xf0] }
 0x952   :  { %v1622_v23 = vpop.xlane.xlu0 %1621 }
 0x953   :  { %3306 = vrcp.f32 %v1622_v23 }
 0x959   :  { %v3307_v13 = vpop.eup %3306 }
 0x95a   :  { %v1636_v15 = vmul.f32 %v3307_v13, %v3299_v59  ;;  %v3220_v13 = vld [vmem:[%s4336_s12 + $0x64] sm:$0xf] }
 0x95c   :  { %v1640_v16 = vpack.c.bf16 %v1636_v15, %v1636_v15  ;;  %v2973_v15 = vor.u32 %v3221_v12, %v2972_v7  ;;  %v3236_v7 = vld [vmem:[%s4338_s14 + $0xe0] sm:$0xff]  ;;  %v3227_v12 = vld [vmem:[%s4338_s14 + $0x98] sm:$0xff] }
 0x95e   :  { %2842 = vmatmul.msk.bf16.vlgmr.msrb.gmra.mxu0 %vm563_vm11, %v1640_v16  ;;  %v2974_v16 = vld [vmem:[%s4336_s12 + $0x68] sm:$0xf0] }
 0x961   :  { %v1628_v17 = vpop.xlane.xlu1 %1627 }
 0x962   :  { %3308 = vrcp.f32 %v1628_v17 }
 0x968   :  { %v3309_v19 = vpop.eup %3308 }
 0x969   :  { %v1638_v20 = vmul.f32 %v3309_v19, %v3301_v4  ;;  %v1631_v21 = vpop.xlane.xlu2 %1630  ;;  %v2977_v19 = vor.u32 %v3220_v13, %v2974_v16  ;;  %v3235_v13 = vld [vmem:[%s4338_s14 + $0xd8] sm:$0xff]  ;;  %v3234_v16 = vld [vmem:[%s4338_s14 + $0xd0] sm:$0xff] }
 0x96a   :  { %v1625_v22 = vpop.xlane.xlu1 %1624  ;;  %3310 = vrcp.f32 %v1631_v21 }
 0x96b   :  { %v1642_v24 = vpack.c.bf16 %v1638_v20, %v1638_v20  ;;  %3312 = vrcp.f32 %v1625_v22  ;;  %v2964_v22 = vld [vmem:[%s4336_s12 + $0x50] sm:$0xf] }
 0x96d   :  { %2844 = vmatmul.msk.bf16.vlgmr.msra.gmra.mxu2 %vm563_vm11, %v1642_v24  ;;  %v3219_v24 = vld [vmem:[%s4336_s12 + $0x54] sm:$0xf0] }
 0x970   :  { %v3311_v25 = vpop.eup %3310 }
 0x971   :  { %v3313_v27 = vpop.eup %3312  ;;  %v1639_v28 = vmul.f32 %v3311_v25, %v3303_v8  ;;  %v2980_v8 = vld [vmem:[%s4336_s12 + $0x70] sm:$0xf]  ;;  %v3218_v25 = vld [vmem:[%s4336_s12 + $0x54] sm:$0xf] }
 0x972   :  { %v1637_v29 = vmul.f32 %v3313_v27, %v3305_v18  ;;  %v3223_v18 = vld [vmem:[%s4336_s12 + $0x74] sm:$0xf0] }
 0x973   :  { %v1643_v30 = vpack.c.bf16 %v1639_v28, %v1639_v28  ;;  %v2981_v46 = vor.u32 %v3223_v18, %v2980_v8  ;;  %v3239_v8 = vld [vmem:[%s4338_s14 + $0xf8] sm:$0xff]  ;;  %v3230_v18 = vld [vmem:[%s4338_s14 + $0xb0] sm:$0xff] }
 0x974   :  { %v1641_v32 = vpack.c.bf16 %v1637_v29, %v1637_v29  ;;  %v2965_v29 = vor.u32 %v3219_v24, %v2964_v22  ;;  %v3232_v22 = vld [vmem:[%s4338_s14 + $0xc0] sm:$0xff] }
 0x975   :  { %2845 = vmatmul.msk.bf16.vlgmr.msra.gmra.mxu3 %vm563_vm11, %v1643_v30  ;;  %2021 = vmatpush.bf16.msrb.mxu2 %v2981_v46  ;;  %v2966_v30 = vld [vmem:[%s4336_s12 + $0x58] sm:$0xf0]  ;;  %v3229_v46 = vld [vmem:[%s4338_s14 + $0xa8] sm:$0xff] }
 0x976   :  { %2843 = vmatmul.msk.bf16.vlgmr.msra.gmra.mxu1 %vm563_vm11, %v1641_v32  ;;  %v2969_v32 = vor.u32 %v3218_v25, %v2966_v30 }
 0x979   :  { %2022 = vmatpush.bf16.msrb.mxu2 %v2973_v15  ;;  %v3226_v15 = vld [vmem:[%s4338_s14 + $0x90] sm:$0xff] }
 0x97d   :  { %2023 = vmatpush.bf16.msrb.mxu2 %v2965_v29 }
 0x981   :  { %2024 = vmatpush.bf16.msrb.mxu2 %v2957_v37 }
 0x9db   :  { %v1663_v47 = vpop.f32.mrf.mxu0 }
 0x9e3   :  { %v1665_v48 = vpop.f32.mrf.mxu0 }
 0x9f0   :  { %v1701_v49 = vpop.f32.mrf.mxu2 }
 0x9f3   :  { %v1682_v53 = vpop.f32.mrf.mxu1 }
 0x9f4   :  { %v1743_v26 = vpack.c.bf16 %v1682_v53, %v1663_v47 }
 0x9f6   :  { %1800 = vmatmul.bf16.vlgmr.msra.gmra.mxu0 %v1743_v26 }
 0x9f8   :  { %v1703_v52 = vpop.f32.mrf.mxu2  ;;  %v1720_v61 = vpop.f32.mrf.mxu3 }
 0x9f9   :  { %v1828_v54 = vpack.c.bf16 %v1720_v61, %v1701_v49 }
 0x9fb   :  { %v1684_v55 = vpop.f32.mrf.mxu1  ;;  %1885 = vmatmul.bf16.vlgmr.msrb.gmra.mxu1 %v1828_v54 }
 0xa00   :  { %v1722_v56 = vpop.f32.mrf.mxu3 }
 0xa73   :  { %v1801_v57 = vpop.f32.mrf.mxu0 }
 0xa74   :  { %v1809_v1 = vadd.f32 %v3255_v58, %v1801_v57 }
 0xa78   :  { %v1886_v59 = vpop.f32.mrf.mxu1 }
 0xa79   :  { %v1891_v60 = vadd.f32 %v1886_v59, %v1809_v1 }
 0xa7b   :  { %v4157_v41 = vadd.f32 %v1891_v60, %v4067_v50  ;;  %v1803_v62 = vpop.f32.mrf.mxu0  ;;  %v3256_v60 = vld [vmem:[%s4334_s10 + $0x1] ss:$0 sm:$0xff] }
 0xa7c   :  { %v1810_v0 = vadd.f32 %v3255_v58, %v1803_v62 }
 0xa7d   :  { %v1899_v63 = vsel %vm164_vm3, %v4157_v41, 0.0  ;;  %v1907_v14 = vmul.f32 %v4157_v41, %v4157_v41 }
 0xa7e   :  { %1900 = vadd.xlane.f32.xlu2 %v1899_v63 }
 0xa7f   :  { %v1909_v2 = vsel %vm164_vm3, %v1907_v14, 0.0 }
 0xa80   :  { %1910 = vadd.xlane.f32.xlu1 %v1909_v2  ;;  %v1888_v42 = vpop.f32.mrf.mxu1 }
 0xa81   :  { %v1892_v4 = vadd.f32 %v1888_v42, %v1810_v0 }
 0xa83   :  { %v4165_v3 = vadd.f32 %v1892_v4, %v4069_v51  ;;  %v3222_v51 = vld [vmem:[%s4336_s12 + $0x74] sm:$0xf]  ;;  %v3257_v4 = vld [vmem:[%s4335_s11 + $0x1] ss:$0 sm:$0xff] }
 0xa84   :  { %v2985_v23 = vor.u32 %v3222_v51, %v2982_v11  ;;  %v3238_v51 = vld [vmem:[%s4338_s14 + $0xf0] sm:$0xff]  ;;  %v3237_v11 = vld [vmem:[%s4338_s14 + $0xe8] sm:$0xff] }
 0xa85   :  { %v1902_v50 = vsel %vm164_vm3, %v4165_v3, 0.0  ;;  %v1908_v5 = vmul.f32 %v4165_v3, %v4165_v3 }
 0xa86   :  { %1903 = vadd.xlane.f32.xlu0 %v1902_v50  ;;  %2035 = vmatpush.bf16.msrb.mxu3 %v2985_v23  ;;  %v3228_v23 = vld [vmem:[%s4338_s14 + $0xa0] sm:$0xff] }
 0xa87   :  { %v1912_v6 = vsel %vm164_vm3, %v1908_v5, 0.0 }
 0xa88   :  { %1913 = vadd.xlane.f32.xlu2 %v1912_v6 }
 0xa8a   :  { %2036 = vmatpush.bf16.msrb.mxu3 %v2977_v19  ;;  %v3233_v19 = vld [vmem:[%s4338_s14 + $0xc8] sm:$0xff] }
 0xa8e   :  { %2037 = vmatpush.bf16.msrb.mxu3 %v2969_v32 }
 0xa92   :  { %2038 = vmatpush.bf16.msrb.mxu3 %v2961_v40 }
 0xa96   :  { %2231 = vmatpush.bf16.msra.mxu3 %v3239_v8 }
 0xa9a   :  { %2232 = vmatpush.bf16.msra.mxu3 %v3238_v51  ;;  %v3258_v51 = vld [vmem:[%s4337_s15 + $0x1] ss:$0 sm:$0xff] }
 0xa9e   :  { %2233 = vmatpush.bf16.msra.mxu3 %v3237_v11 }
 0xaa2   :  { %2234 = vmatpush.bf16.msra.mxu3 %v3236_v7 }
 0xaa6   :  { %2235 = vmatpush.bf16.msra.mxu3 %v3235_v13 }
 0xaaa   :  { %2236 = vmatpush.bf16.msra.mxu3 %v3234_v16 }
 0xaae   :  { %2237 = vmatpush.bf16.msra.mxu3 %v3233_v19 }
 0xab2   :  { %2238 = vmatpush.bf16.msra.mxu3 %v3232_v22 }
 0xaf1   :  { %v1901_v17 = vpop.xlane.xlu2 %1900 }
 0xaf2   :  { %v1905_v20 = vmul.f32 0.015625, %v1901_v17  ;;  %v3225_v17 = vld [vmem:[%s4338_s14 + $0x88] sm:$0xff] }
 0xaf3   :  { %v1911_v21 = vpop.xlane.xlu1 %1910 }
 0xaf4   :  { %v1917_v27 = vmul.f32 %v1905_v20, %v1905_v20  ;;  %v1915_v28 = vmul.f32 0.015625, %v1911_v21  ;;  %v1921_v1 = vsub.f32 %v4157_v41, %v1905_v20  ;;  %v2953_v20 = vld [vmem:[%s4339_s13 + $0x2] sm:$0x3] }
 0xaf5   :  { %v3224_v21 = vld [vmem:[%s4338_s14 + $0x80] sm:$0xff]  ;;  %v1970_v24 = vperm.slane %v2953_v20, 0  ;;  %v1971_v25 = vperm.slane %v2953_v20, 1 }
 0xaf6   :  { %v1919_v33 = vsub.f32 %v1915_v28, %v1917_v27 }
 0xaf8   :  { %v1923_v9 = vadd.f32 1e-12, %v1919_v33 }
 0xaf9   :  { %v1904_v31 = vpop.xlane.xlu0 %1903 }
 0xafa   :  { %3314 = vrsqrt.f32 %v1923_v9  ;;  %v1906_v43 = vmul.f32 0.015625, %v1904_v31  ;;  %vm1931_vm10 = vweird.f32 %v1923_v9 }
 0xafb   :  { %v1914_v38 = vpop.xlane.xlu2 %1913 }
 0xafc   :  { %v1918_v10 = vmul.f32 %v1906_v43, %v1906_v43  ;;  %v1916_v44 = vmul.f32 0.015625, %v1914_v38  ;;  %v1922_v14 = vsub.f32 %v4165_v3, %v1906_v43  ;;  %v3231_v3 = vld [vmem:[%s4338_s14 + $0xb8] sm:$0xff] }
 0xafd   :  { %2217 = vmatpush.bf16.msra.mxu2 %v3231_v3 }
 0xafe   :  { %v1920_v45 = vsub.f32 %v1916_v44, %v1918_v10 }
 0xb00   :  { %v3315_v47 = vpop.eup %3314  ;;  %v1924_v48 = vadd.f32 1e-12, %v1920_v45 }
 0xb01   :  { %v1926_v49 = vmul.f32 %v3315_v47, %v1923_v9  ;;  %vm1932_vm9 = vweird.f32 %v3315_v47  ;;  %2218 = vmatpush.bf16.msra.mxu2 %v3230_v18 }
 0xb02   :  { %3316 = vrsqrt.f32 %v1924_v48  ;;  %vm1933_vm11 = vmor %vm1931_vm10, %vm1932_vm9  ;;  %vm1941_vm13 = vweird.f32 %v1924_v48 }
 0xb03   :  { %v1927_v53 = vmul.f32 %v3315_v47, %v1926_v49 }
 0xb05   :  { %v1928_v26 = vmul.f32 0.5, %v1927_v53  ;;  %2219 = vmatpush.bf16.msra.mxu2 %v3229_v46 }
 0xb07   :  { %v1929_v52 = vsub.f32 1.5, %v1928_v26 }
 0xb08   :  { %v3317_v61 = vpop.eup %3316 }
 0xb09   :  { %v1930_v54 = vmul.f32 %v3315_v47, %v1929_v52  ;;  %v1936_v55 = vmul.f32 %v3317_v61, %v1924_v48  ;;  %vm1942_vm12 = vweird.f32 %v3317_v61  ;;  %2220 = vmatpush.bf16.msra.mxu2 %v3228_v23 }
 0xb0a   :  { %vm1943_vm14 = vmor %vm1941_vm13, %vm1942_vm12 }
 0xb0b   :  { %v1937_v56 = vmul.f32 %v3317_v61, %v1936_v55  ;;  %v1934_v57 = vsel %vm1933_vm11, %v3315_v47, %v1930_v54 }
 0xb0c   :  { %v1945_v62 = vmul.f32 %v1934_v57, %v1921_v1 }
 0xb0d   :  { %v1938_v58 = vmul.f32 0.5, %v1937_v56  ;;  %2221 = vmatpush.bf16.msra.mxu2 %v3227_v12 }
 0xb0e   :  { %v1950_v2 = vmul.f32 %v3256_v60, %v1945_v62 }
 0xb0f   :  { %v1939_v59 = vsub.f32 1.5, %v1938_v58 }
 0xb10   :  { %v4228_v50 = vadd.f32 %v3257_v4, %v1950_v2 }
 0xb11   :  { %v1940_v63 = vmul.f32 %v3317_v61, %v1939_v59  ;;  %2222 = vmatpush.bf16.msra.mxu2 %v3226_v15 }
 0xb13   :  { %v1944_v0 = vsel %vm1943_vm14, %v3317_v61, %v1940_v63 }
 0xb14   :  { %v1946_v42 = vmul.f32 %v1944_v0, %v1922_v14 }
 0xb15   :  { %2223 = vmatpush.bf16.msra.mxu2 %v3225_v17 }
 0xb16   :  { %v1951_v41 = vmul.f32 %v3256_v60, %v1946_v42 }
 0xb18   :  { %v4230_v5 = vadd.f32 %v3257_v4, %v1951_v41 }
 0xb19   :  { %2224 = vmatpush.bf16.msra.mxu2 %v3224_v21 }
 0xb1a   :  { %v1966_v6 = vpack.c.bf16 %v4230_v5, %v4228_v50 }
 0xb1c   :  { %2986 = vmatmul.msk.bf16.vlgmr.msrb.gmra.mxu2 %vm164_vm3, %v1966_v6  ;;  %2987 = vmatmul.msk.bf16.vlgmr.msrb.gmra.mxu3 %vm164_vm3, %v1966_v6 }
 0xb9f   :  { %v2026_v27 = vpop.f32.mrf.mxu2  ;;  %v2040_v28 = vpop.f32.mrf.mxu3 }
 0xba0   :  { %v2027_v29 = vadd.f32 %v2026_v27, %v1970_v24  ;;  %v2041_v30 = vadd.f32 %v2040_v28, %v1971_v25  ;;  %v3242_v28 = vld [vmem:[%s4343_s18 + $0x10] sm:$0xff] }
 0xba2   :  { %v2049_v32 = vmul.f32 0.044715, %v2027_v29  ;;  %v2050_v33 = vmul.f32 0.044715, %v2041_v30  ;;  %v2045_v62 = vmul.f32 0.5, %v2027_v29  ;;  %v2046_v0 = vmul.f32 0.5, %v2041_v30 }
 0xba4   :  { %v2053_v34 = vmul.f32 %v2049_v32, %v2027_v29  ;;  %v2054_v35 = vmul.f32 %v2050_v33, %v2041_v30 }
 0xba6   :  { %v2057_v36 = vmul.f32 %v2053_v34, %v2027_v29  ;;  %v2058_v37 = vmul.f32 %v2054_v35, %v2041_v30  ;;  %v3241_v34 = vld [vmem:[%s4343_s18 + $0x8] sm:$0xff] }
 0xba7   :  { %v2028_v39 = vpop.f32.mrf.mxu2  ;;  %v2042_v9 = vpop.f32.mrf.mxu3 }
 0xba8   :  { %v2061_v40 = vadd.f32 %v2057_v36, %v2027_v29  ;;  %v2029_v31 = vadd.f32 %v2028_v39, %v1970_v24  ;;  %v2043_v43 = vadd.f32 %v2042_v9, %v1971_v25  ;;  %v2062_v38 = vadd.f32 %v2058_v37, %v2041_v30  ;;  %v3240_v36 = vld [vmem:[%s4343_s18] sm:$0xff] }
 0xbaa   :  { %v2051_v10 = vmul.f32 0.044715, %v2029_v31  ;;  %v2052_v44 = vmul.f32 0.044715, %v2043_v43  ;;  %v2065_v45 = vmul.f32 0.7978846, %v2061_v40 }
 0xbab   :  { %v2066_v48 = vmul.f32 0.7978846, %v2062_v38  ;;  %v2047_v63 = vmul.f32 0.5, %v2029_v31  ;;  %v2048_v2 = vmul.f32 0.5, %v2043_v43 }
 0xbac   :  { %v2055_v47 = vmul.f32 %v2051_v10, %v2029_v31  ;;  %v2056_v49 = vmul.f32 %v2052_v44, %v2043_v43  ;;  %3318 = vtanh.f32 %v2065_v45 }
 0xbad   :  { %3320 = vtanh.f32 %v2066_v48 }
 0xbae   :  { %v2059_v53 = vmul.f32 %v2055_v47, %v2029_v31  ;;  %v2060_v26 = vmul.f32 %v2056_v49, %v2043_v43 }
 0xbb0   :  { %v2063_v52 = vadd.f32 %v2059_v53, %v2029_v31  ;;  %v2064_v61 = vadd.f32 %v2060_v26, %v2043_v43 }
 0xbb2   :  { %v2067_v54 = vmul.f32 0.7978846, %v2063_v52  ;;  %v2068_v55 = vmul.f32 0.7978846, %v2064_v61  ;;  %v3319_v56 = vpop.eup %3318 }
 0xbb3   :  { %v3321_v57 = vpop.eup %3320  ;;  %v2073_v58 = vadd.f32 1.0, %v3319_v56 }
 0xbb4   :  { %3322 = vtanh.f32 %v2067_v54  ;;  %v2074_v59 = vadd.f32 1.0, %v3321_v57 }
 0xbb5   :  { %3324 = vtanh.f32 %v2068_v55  ;;  %v2077_v4 = vmul.f32 %v2073_v58, %v2045_v62  ;;  %v3259_v58 = vld [vmem:[%s4340_s16 + $0x1] ss:$0 sm:$0xff] }
 0xbb6   :  { %v2078_v6 = vmul.f32 %v2074_v59, %v2046_v0  ;;  %v3260_v0 = vld [vmem:[%s4341_s17 + $0x1] ss:$0 sm:$0xff] }
 0xbba   :  { %v3323_v1 = vpop.eup %3322 }
 0xbbb   :  { %v3325_v60 = vpop.eup %3324  ;;  %v2075_v14 = vadd.f32 1.0, %v3323_v1 }
 0xbbc   :  { %v2076_v42 = vadd.f32 1.0, %v3325_v60 }
 0xbbd   :  { %v2079_v41 = vmul.f32 %v2075_v14, %v2047_v63 }
 0xbbe   :  { %v2080_v3 = vmul.f32 %v2076_v42, %v2048_v2 }
 0xbbf   :  { %v2114_v8 = vpack.c.bf16 %v2079_v41, %v2077_v4 }
 0xbc0   :  { %v2115_v18 = vpack.c.bf16 %v2080_v3, %v2078_v6  ;;  %v3261_v6 = vld [vmem:[%s4342_s19] ss:$0 sm:$0xff] }
 0xbc1   :  { %2225 = vmatmul.bf16.vlgmr.msra.gmra.mxu2 %v2114_v8 }
 0xbc2   :  { %2239 = vmatmul.bf16.vlgmr.msra.gmra.mxu3 %v2115_v18 }
 0xc44   :  { %v2226_v46 = vpop.f32.mrf.mxu2 }
 0xc45   :  { %v2227_v11 = vadd.f32 %v3258_v51, %v2226_v46  ;;  %v2240_v23 = vpop.f32.mrf.mxu3 }
 0xc47   :  { %v2241_v7 = vadd.f32 %v2240_v23, %v2227_v11 }
 0xc49   :  { %v2245_v12 = vadd.f32 %v2241_v7, %v4228_v50  ;;  %v3243_v50 = vld [vmem:[%s4343_s18 + $0x18] sm:$0xff] }
 0xc4a   :  { %2353 = vmatpush.bf16.msrb.mxu0 %v3243_v50 }
 0xc4b   :  { %v2251_v13 = vsel %vm164_vm3, %v2245_v12, 0.0  ;;  %v2259_v15 = vmul.f32 %v2245_v12, %v2245_v12 }
 0xc4c   :  { %v2228_v16 = vpop.f32.mrf.mxu2  ;;  %2252 = vadd.xlane.f32.xlu0 %v2251_v13 }
 0xc4d   :  { %v2229_v17 = vadd.f32 %v3258_v51, %v2228_v16  ;;  %v2261_v19 = vsel %vm164_vm3, %v2259_v15, 0.0  ;;  %v2242_v20 = vpop.f32.mrf.mxu3 }
 0xc4e   :  { %2262 = vadd.xlane.f32.xlu2 %v2261_v19  ;;  %2354 = vmatpush.bf16.msrb.mxu0 %v3242_v28 }
 0xc4f   :  { %v2243_v21 = vadd.f32 %v2242_v20, %v2229_v17 }
 0xc51   :  { %v2246_v22 = vadd.f32 %v2243_v21, %v4230_v5 }
 0xc52   :  { %2355 = vmatpush.bf16.msrb.mxu0 %v3241_v34 }
 0xc53   :  { %v2254_v24 = vsel %vm164_vm3, %v2246_v22, 0.0  ;;  %v2260_v25 = vmul.f32 %v2246_v22, %v2246_v22 }
 0xc54   :  { %2255 = vadd.xlane.f32.xlu1 %v2254_v24 }
 0xc55   :  { %v2264_v27 = vsel %vm164_vm3, %v2260_v25, 0.0 }
 0xc56   :  { %2265 = vadd.xlane.f32.xlu0 %v2264_v27  ;;  %2356 = vmatpush.bf16.msrb.mxu0 %v3240_v36 }
 0xcbf   :  { %v2253_v29 = vpop.xlane.xlu0 %2252 }
 0xcc0   :  { %v2257_v30 = vmul.f32 0.015625, %v2253_v29 }
 0xcc1   :  { %v2263_v5 = vpop.xlane.xlu2 %2262 }
 0xcc2   :  { %v2269_v32 = vmul.f32 %v2257_v30, %v2257_v30  ;;  %v2267_v33 = vmul.f32 0.015625, %v2263_v5  ;;  %v2273_v56 = vsub.f32 %v2245_v12, %v2257_v30 }
 0xcc4   :  { %v2271_v35 = vsub.f32 %v2267_v33, %v2269_v32 }
 0xcc6   :  { %v2275_v37 = vadd.f32 1e-12, %v2271_v35 }
 0xcc7   :  { %v2256_v39 = vpop.xlane.xlu1 %2255 }
 0xcc8   :  { %3326 = vrsqrt.f32 %v2275_v37  ;;  %v2258_v9 = vmul.f32 0.015625, %v2256_v39  ;;  %vm2283_vm0 = vweird.f32 %v2275_v37 }
 0xcc9   :  { %v2266_v40 = vpop.xlane.xlu0 %2265 }
 0xcca   :  { %v2270_v31 = vmul.f32 %v2258_v9, %v2258_v9  ;;  %v2268_v43 = vmul.f32 0.015625, %v2266_v40  ;;  %v2274_v60 = vsub.f32 %v2246_v22, %v2258_v9 }
 0xccc   :  { %v2272_v38 = vsub.f32 %v2268_v43, %v2270_v31 }
 0xcce   :  { %v3327_v10 = vpop.eup %3326  ;;  %v2276_v44 = vadd.f32 1e-12, %v2272_v38 }
 0xccf   :  { %v2278_v45 = vmul.f32 %v3327_v10, %v2275_v37  ;;  %vm2284_vm15 = vweird.f32 %v3327_v10 }
 0xcd0   :  { %3328 = vrsqrt.f32 %v2276_v44  ;;  %vm2285_vm1 = vmor %vm2283_vm0, %vm2284_vm15  ;;  %vm2293_vm4 = vweird.f32 %v2276_v44 }
 0xcd1   :  { %v2279_v47 = vmul.f32 %v3327_v10, %v2278_v45 }
 0xcd3   :  { %v2280_v48 = vmul.f32 0.5, %v2279_v47 }
 0xcd5   :  { %v2281_v49 = vsub.f32 1.5, %v2280_v48 }
 0xcd6   :  { %v3329_v53 = vpop.eup %3328 }
 0xcd7   :  { %v2282_v26 = vmul.f32 %v3327_v10, %v2281_v49  ;;  %v2288_v52 = vmul.f32 %v3329_v53, %v2276_v44  ;;  %vm2294_vm2 = vweird.f32 %v3329_v53 }
 0xcd8   :  { %vm2295_vm5 = vmor %vm2293_vm4, %vm2294_vm2 }
 0xcd9   :  { %v2289_v61 = vmul.f32 %v3329_v53, %v2288_v52  ;;  %v2286_v54 = vsel %vm2285_vm1, %v3327_v10, %v2282_v26 }
 0xcda   :  { %v2297_v1 = vmul.f32 %v2286_v54, %v2273_v56 }
 0xcdb   :  { %v2290_v55 = vmul.f32 0.5, %v2289_v61 }
 0xcdc   :  { %v2302_v63 = vmul.f32 %v3259_v58, %v2297_v1 }
 0xcdd   :  { %v2291_v57 = vsub.f32 1.5, %v2290_v55 }
 0xcde   :  { %v2307_v42 = vadd.f32 %v3260_v0, %v2302_v63 }
 0xcdf   :  { %v2292_v59 = vmul.f32 %v3329_v53, %v2291_v57 }
 0xce1   :  { %v2296_v62 = vsel %vm2295_vm5, %v3329_v53, %v2292_v59 }
 0xce2   :  { %v2298_v14 = vmul.f32 %v2296_v62, %v2274_v60 }
 0xce4   :  { %v2303_v2 = vmul.f32 %v3259_v58, %v2298_v14 }
 0xce6   :  { %v2308_v4 = vadd.f32 %v3260_v0, %v2303_v2 }
 0xce8   :  { %v2317_v41 = vpack.c.bf16 %v2308_v4, %v2307_v42 }
 0xcea   :  { %3103 = vmatmul.msk.bf16.vlgmr.msrb.gmra.mxu0 %vm164_vm3, %v2317_v41 }
 0xd67   :  { %v2358_v3 = vpop.f32.mrf.mxu0 }
 0xd68   :  { %v2359_v8 = vadd.f32 %v3261_v6, %v2358_v3 }
 0xd6a   :  { %2363 = vst [vmem:[%s4344_s20] sm:$0xff] %v2359_v8 }
 0xd6f   :  { %v2360_v18 = vpop.f32.mrf.mxu0 }
 0xd70   :  { %v2361_v51 = vadd.f32 %v3261_v6, %v2360_v18 }
 0xd72   :  { %2364 = vst [vmem:[%s4344_s20 + $0x8] sm:$0xff] %v2361_v51 }

</bundles_post_ra>
